<compile_context>
chip_gen: v7x
topology: tpu7x:2x2x1
jax: 0.10.0
libtpu: 0.0.40
codegen_flags: <defaults>
</compile_context>

<pallas_src>
import jax
import jax.numpy as jnp
from jax.experimental import pallas as pl
from jax.experimental.pallas import tpu as pltpu


def _round_up(a, m):
    return (a + m - 1) // m * m


def _pick_batch_tile(batch, per_image_bytes, target_bytes=4 << 20):
    """Largest divisor Bt of batch with Bt*per_image <= target and, when
    batch >= 2, at least 2 parallel grid steps left (megacore / v7x 2 TCs)."""
    best = 1
    for d in range(1, batch + 1):
        if batch % d:
            continue
        if batch >= 2 and batch // d < 2:
            continue
        if d * per_image_bytes <= target_bytes:
            best = max(best, d)
    return best


def _pick_row_strip(H, Wp, C, Cout, el_bytes, budget_bytes=12 << 20):
    """Output rows computed per in-kernel strip; bounds the slab, im2col and
    dot-result temporaries (the VMEM hogs) to budget_bytes."""
    Hs = H
    while Hs > 1:
        Lg = _round_up(Hs * Wp, 128)
        npad = _round_up(2 * Wp + 2 + Lg, 128)
        temps = (C * npad * el_bytes          # zero-padded slab
                 + 9 * C * Lg * el_bytes      # im2col tap slab
                 + 2 * Cout * Lg * 4)         # f32 dot result + out-dtype copy
        if temps <= budget_bytes:
            break
        Hs = max(1, (Hs + 1) // 2)
    return Hs


def depthwise_separable_conv(x_nchw, dw_w, dw_b, pw_w, pw_b,
                             *, taps_on_mxu=None, row_strip=None):
    """x_nchw: (B, C, H, W); dw_w: (C,1,3,3); dw_b: (C,);
       pw_w: (Cout, C, 1, 1); pw_b: (Cout,).  Returns (B, Cout, H, W)."""
    B, C, H, W = x_nchw.shape
    Cout = pw_w.shape[0]
    Wp = W + 2                                   # padded row stride

    compute_dtype = jnp.bfloat16 if x_nchw.dtype == jnp.bfloat16 else jnp.float32
    el = jnp.dtype(compute_dtype).itemsize

    if taps_on_mxu is None:
        # While the pointwise dot is K-starved the extra 9x MXU FLOPs are free;
        # for very large C fall back to VPU tap MACs + plain (Cout,C) dot.
        taps_on_mxu = C <= 128

    Bt = _pick_batch_tile(B, C * H * W * x_nchw.dtype.itemsize)
    Hs = row_strip if row_strip is not None else _pick_row_strip(H, Wp, C, Cout, el)
    Hs = max(1, min(int(Hs), H))
    n_strips = -(-H // Hs)
    Lg = _round_up(Hs * Wp, 128)                 # lane-dense strip width
    Npad = _round_up(2 * Wp + 2 + Lg, 128)       # slab length (all taps in range)

    # ---- weight prep (tiny, wrapper side) -----------------------------------
    dw9 = dw_w[:, 0, :, :].reshape(C, 9).astype(jnp.float32)          # (C, 9)
    pw2 = pw_w[:, :, 0, 0].astype(jnp.float32)                        # (Cout, C)
    # Depthwise bias folded into the pointwise bias (exact).
    pb_eff = (pw_b.astype(jnp.float32)
              + pw2 @ dw_b.astype(jnp.float32)).reshape(Cout, 1)      # (Cout, 1)
    # Fused depthwise+pointwise weight, row order t*C + c (matches tap slab).
    weff = jnp.einsum("oc,ct->otc", pw2, dw9).reshape(Cout, 9 * C)    # (Cout, 9C)

    taps = tuple(di * Wp + dj for di in range(3) for dj in range(3))  # 9 offsets

    # ---- in-kernel helpers (all indices static) ------------------------------
    def _build_slab(x_ref, slab_ref, bt, r0, rows):
        # Zero-pad + flatten input rows [r0-1, r0+rows] of image `bt` into the
        # slab with row stride Wp; pad cells (borders) come from the memset.
        slab_ref[...] = jnp.zeros_like(slab_ref)
        for k in range(rows + 2):
            r = r0 + k - 1
            if 0 <= r < H:
                row = x_ref[bt, :, r:r + 1, :][:, 0, :].astype(compute_dtype)
                slab_ref[:, k * Wp + 1:k * Wp + 1 + W] = row

    def _store_strip(o_ref, out_slab, bt, r0, rows):
        # Extract the W valid columns of each output row -> one strip store.
        strip = jnp.stack(
            [out_slab[:, j * Wp:j * Wp + W] for j in range(rows)], axis=1)
        o_ref[bt, :, r0:r0 + rows, :] = strip               # (Cout, rows, W)

    def _strips():
        for bt in range(Bt):
            for s in range(n_strips):
                r0 = s * Hs
                yield bt, r0, min(Hs, H - r0)

    # ---- kernels --------------------------------------------------------------
    def kernel_mxu(x_ref, weff_ref, pb_ref, o_ref, slab_ref, tap_ref):
        w = weff_ref[...]                                    # (Cout, 9C)
        pb = pb_ref[...]                                     # (Cout, 1) f32
        for bt, r0, rows in _strips():
            _build_slab(x_ref, slab_ref, bt, r0, rows)
            # im2col: 9 lane-shifted slices stacked along K -> one MXU dot.
            for t, off in enumerate(taps):
                tap_ref[t * C:(t + 1) * C, :] = slab_ref[:, off:off + Lg]
            out = jnp.dot(w, tap_ref[...], preferred_element_type=jnp.float32)
            out = (out + pb).astype(o_ref.dtype)             # (Cout, Lg)
            _store_strip(o_ref, out, bt, r0, rows)

    def kernel_vpu(x_ref, dw_ref, pw_ref, pb_ref, o_ref, slab_ref):
        # Fallback for very large C: fused 9-tap VPU MAC + plain (Cout,C) dot.
        dw = dw_ref[...]                                     # (C, 9) f32
        pw = pw_ref[...]                                     # (Cout, C) f32
        pb = pb_ref[...]                                     # (Cout, 1) f32
        for bt, r0, rows in _strips():
            _build_slab(x_ref, slab_ref, bt, r0, rows)
            xp = slab_ref[...].astype(jnp.float32)           # single cast pass
            acc = xp[:, taps[0]:taps[0] + Lg] * dw[:, 0:1]
            for t in range(1, 9):
                acc = acc + xp[:, taps[t]:taps[t] + Lg] * dw[:, t:t + 1]
            out = jnp.dot(pw, acc, preferred_element_type=jnp.float32)
            out = (out + pb).astype(o_ref.dtype)
            _store_strip(o_ref, out, bt, r0, rows)

    # ---- pallas_call ----------------------------------------------------------
    x_spec = pl.BlockSpec((Bt, C, H, W), lambda b: (b, 0, 0, 0))
    o_spec = pl.BlockSpec((Bt, Cout, H, W), lambda b: (b, 0, 0, 0))

    if taps_on_mxu:
        kernel = kernel_mxu
        w_args = (weff.astype(compute_dtype), pb_eff)
        w_specs = [pl.BlockSpec((Cout, 9 * C), lambda b: (0, 0)),
                   pl.BlockSpec((Cout, 1), lambda b: (0, 0))]
        scratch = [pltpu.VMEM((C, Npad), compute_dtype),
                   pltpu.VMEM((9 * C, Lg), compute_dtype)]
        flops = B * H * W * (2 * 9 * C * Cout + Cout)
    else:
        kernel = kernel_vpu
        w_args = (dw9, pw2, pb_eff)
        w_specs = [pl.BlockSpec((C, 9), lambda b: (0, 0)),
                   pl.BlockSpec((Cout, C), lambda b: (0, 0)),
                   pl.BlockSpec((Cout, 1), lambda b: (0, 0))]
        scratch = [pltpu.VMEM((C, Npad), compute_dtype)]
        flops = B * H * W * (2 * 9 * C + 2 * C * Cout + Cout)

    bytes_accessed = int(
        x_nchw.size * x_nchw.dtype.itemsize
        + B * Cout * H * W * x_nchw.dtype.itemsize
        + sum(int(a.size) * a.dtype.itemsize for a in w_args))

    return pl.pallas_call(
        kernel,
        out_shape=jax.ShapeDtypeStruct((B, Cout, H, W), x_nchw.dtype),
        grid_spec=pltpu.PrefetchScalarGridSpec(
            num_scalar_prefetch=0,
            grid=(B // Bt,),
            in_specs=[x_spec] + w_specs,
            out_specs=o_spec,
            scratch_shapes=scratch,
        ),
        compiler_params=pltpu.CompilerParams(
            dimension_semantics=("parallel",)),
        cost_estimate=pl.CostEstimate(
            flops=int(flops), transcendentals=0,
            bytes_accessed=bytes_accessed),
    )(x_nchw, *w_args)


def _reference(x, dw_w, dw_b, pw_w, pw_b):
    # Pure-JAX reference matching the PyTorch module semantics.
    y = jax.lax.conv_general_dilated(
        x, dw_w, window_strides=(1, 1), padding="SAME",
        dimension_numbers=("NCHW", "OIHW", "NCHW"),
        feature_group_count=x.shape[1],
    ) + dw_b[None, :, None, None]
    z = jax.lax.conv_general_dilated(
        y, pw_w, window_strides=(1, 1), padding="SAME",
        dimension_numbers=("NCHW", "OIHW", "NCHW"),
    ) + pw_b[None, :, None, None]
    return z


if __name__ == "__main__":
    key = jax.random.PRNGKey(0)
    k_x, k_dw, k_dwb, k_pw, k_pwb, k_x4 = jax.random.split(key, 6)

    B, C, H, W = 2, 4, 16, 16
    Cout = 8

    x = jax.random.normal(k_x, (B, C, H, W), dtype=jnp.float32)

    # Deterministic PyTorch-style uniform init (synthetic values).
    bound_dw = 1.0 / (9 ** 0.5)          # in_ch/groups * 3*3 = 9
    dw_w = jax.random.uniform(k_dw, (C, 1, 3, 3), jnp.float32, -bound_dw, bound_dw)
    dw_b = jax.random.uniform(k_dwb, (C,), jnp.float32, -bound_dw, bound_dw)
    bound_pw = 1.0 / (C ** 0.5)
    pw_w = jax.random.uniform(k_pw, (Cout, C, 1, 1), jnp.float32, -bound_pw, bound_pw)
    pw_b = jax.random.uniform(k_pwb, (Cout,), jnp.float32, -bound_pw, bound_pw)

    ref = jax.block_until_ready(_reference(x, dw_w, dw_b, pw_w, pw_b))

    # 1) Default: im2col-on-MXU path, single strip, Bt=1 -> 2 parallel steps.
    out = jax.block_until_ready(depthwise_separable_conv(x, dw_w, dw_b, pw_w, pw_b))
    assert out.shape == (B, Cout, H, W)
    assert jnp.allclose(out, ref, atol=1e-4, rtol=1e-4), "MXU path mismatch"

    # 2) VPU fallback path (picked automatically for very large C).
    out_vpu = jax.block_until_ready(
        depthwise_separable_conv(x, dw_w, dw_b, pw_w, pw_b, taps_on_mxu=False))
    assert jnp.allclose(out_vpu, ref, atol=1e-4, rtol=1e-4), "VPU path mismatch"

    # 3) Batched grid step (Bt=2) + ragged in-kernel row strips (5,5,5,1).
    x4 = jax.random.normal(k_x4, (4, C, H, W), dtype=jnp.float32)
    ref4 = jax.block_until_ready(_reference(x4, dw_w, dw_b, pw_w, pw_b))
    out4 = jax.block_until_ready(
        depthwise_separable_conv(x4, dw_w, dw_b, pw_w, pw_b, row_strip=5))
    assert jnp.allclose(out4, ref4, atol=1e-4, rtol=1e-4), "strip/batch-tile mismatch"

    print("KERNEL_OK")
</pallas_src>

<mosaic_0001>
module attributes {stable_mosaic.version = 11 : i64} {
  func.func @kernel_mxu(%arg0: i32, %arg1: memref<1x4x16x16xf32, #tpu.memory_space<vmem>>, %arg2: memref<8x36xf32, #tpu.memory_space<vmem>>, %arg3: memref<8x1xf32, #tpu.memory_space<vmem>>, %arg4: memref<1x8x16x16xf32, #tpu.memory_space<vmem>>, %arg5: memref<4x512xf32, #tpu.memory_space<vmem>>, %arg6: memref<36x384xf32, #tpu.memory_space<vmem>>) attributes {dimension_semantics = [#tpu.dimension_semantics<parallel>], iteration_bounds = array<i64: 2>, scalar_prefetch = 0 : i64, scratch_operands = 2 : i64, tpu.core_type = #tpu.core_type<tc>, window_params = [{transform_indices = @transform_0, window_bounds = array<i64: 1, 4, 16, 16>}, {pipeline_mode = #tpu.pipeline_mode<synchronous>, transform_indices = @transform_1, window_bounds = array<i64: 8, 36>}, {pipeline_mode = #tpu.pipeline_mode<synchronous>, transform_indices = @transform_2, window_bounds = array<i64: 8, 1>}, {transform_indices = @transform_3, window_bounds = array<i64: 1, 8, 16, 16>}]} {
    %c0 = arith.constant 0 : index
    %c0_0 = arith.constant 0 : index
    %0 = vector.load %arg2[%c0, %c0_0] : memref<8x36xf32, #tpu.memory_space<vmem>>, vector<8x36xf32>
    %c0_1 = arith.constant 0 : index
    %c0_2 = arith.constant 0 : index
    %1 = vector.load %arg3[%c0_1, %c0_2] : memref<8x1xf32, #tpu.memory_space<vmem>>, vector<8x1xf32>
    %cst = arith.constant 0.000000e+00 : f32
    %2 = vector.broadcast %cst : f32 to vector<4x512xf32>
    %c0_3 = arith.constant 0 : index
    %c0_4 = arith.constant 0 : index
    %3 = vector.load %arg5[%c0_3, %c0_4] : memref<4x512xf32, #tpu.memory_space<vmem>>, vector<4x512xf32>
    tpu.vector_store %arg5[%c0_3, %c0_4], %2 {strides = array<i32>} : memref<4x512xf32, #tpu.memory_space<vmem>>, vector<4x512xf32>,
    %c0_5 = arith.constant 0 : index
    %c0_6 = arith.constant 0 : index
    %c0_7 = arith.constant 0 : index
    %c0_8 = arith.constant 0 : index
    %4 = vector.load %arg1[%c0_5, %c0_6, %c0_7, %c0_8] : memref<1x4x16x16xf32, #tpu.memory_space<vmem>>, vector<1x4x1x16xf32>
    %5 = vector.shape_cast %4 : vector<1x4x1x16xf32> to vector<4x1x16xf32>
    %6 = vector.shape_cast %5 : vector<4x1x16xf32> to vector<4x16xf32>
    %c0_9 = arith.constant 0 : index
    %c19 = arith.constant 19 : index
    %7 = vector.load %arg5[%c0_9, %c19] : memref<4x512xf32, #tpu.memory_space<vmem>>, vector<4x16xf32>
    tpu.vector_store %arg5[%c0_9, %c19], %6 {strides = array<i32>} : memref<4x512xf32, #tpu.memory_space<vmem>>, vector<4x16xf32>,
    %c0_10 = arith.constant 0 : index
    %c0_11 = arith.constant 0 : index
    %c1 = arith.constant 1 : index
    %c0_12 = arith.constant 0 : index
    %8 = vector.load %arg1[%c0_10, %c0_11, %c1, %c0_12] : memref<1x4x16x16xf32, #tpu.memory_space<vmem>>, vector<1x4x1x16xf32>
    %9 = vector.shape_cast %8 : vector<1x4x1x16xf32> to vector<4x1x16xf32>
    %10 = vector.shape_cast %9 : vector<4x1x16xf32> to vector<4x16xf32>
    %c0_13 = arith.constant 0 : index
    %c37 = arith.constant 37 : index
    %11 = vector.load %arg5[%c0_13, %c37] : memref<4x512xf32, #tpu.memory_space<vmem>>, vector<4x16xf32>
    tpu.vector_store %arg5[%c0_13, %c37], %10 {strides = array<i32>} : memref<4x512xf32, #tpu.memory_space<vmem>>, vector<4x16xf32>,
    %c0_14 = arith.constant 0 : index
    %c0_15 = arith.constant 0 : index
    %c2 = arith.constant 2 : index
    %c0_16 = arith.constant 0 : index
    %12 = vector.load %arg1[%c0_14, %c0_15, %c2, %c0_16] : memref<1x4x16x16xf32, #tpu.memory_space<vmem>>, vector<1x4x1x16xf32>
    %13 = vector.shape_cast %12 : vector<1x4x1x16xf32> to vector<4x1x16xf32>
    %14 = vector.shape_cast %13 : vector<4x1x16xf32> to vector<4x16xf32>
    %c0_17 = arith.constant 0 : index
    %c55 = arith.constant 55 : index
    %15 = vector.load %arg5[%c0_17, %c55] : memref<4x512xf32, #tpu.memory_space<vmem>>, vector<4x16xf32>
    tpu.vector_store %arg5[%c0_17, %c55], %14 {strides = array<i32>} : memref<4x512xf32, #tpu.memory_space<vmem>>, vector<4x16xf32>,
    %c0_18 = arith.constant 0 : index
    %c0_19 = arith.constant 0 : index
    %c3 = arith.constant 3 : index
    %c0_20 = arith.constant 0 : index
    %16 = vector.load %arg1[%c0_18, %c0_19, %c3, %c0_20] : memref<1x4x16x16xf32, #tpu.memory_space<vmem>>, vector<1x4x1x16xf32>
    %17 = vector.shape_cast %16 : vector<1x4x1x16xf32> to vector<4x1x16xf32>
    %18 = vector.shape_cast %17 : vector<4x1x16xf32> to vector<4x16xf32>
    %c0_21 = arith.constant 0 : index
    %c73 = arith.constant 73 : index
    %19 = vector.load %arg5[%c0_21, %c73] : memref<4x512xf32, #tpu.memory_space<vmem>>, vector<4x16xf32>
    tpu.vector_store %arg5[%c0_21, %c73], %18 {strides = array<i32>} : memref<4x512xf32, #tpu.memory_space<vmem>>, vector<4x16xf32>,
    %c0_22 = arith.constant 0 : index
    %c0_23 = arith.constant 0 : index
    %c4 = arith.constant 4 : index
    %c0_24 = arith.constant 0 : index
    %20 = vector.load %arg1[%c0_22, %c0_23, %c4, %c0_24] : memref<1x4x16x16xf32, #tpu.memory_space<vmem>>, vector<1x4x1x16xf32>
    %21 = vector.shape_cast %20 : vector<1x4x1x16xf32> to vector<4x1x16xf32>
    %22 = vector.shape_cast %21 : vector<4x1x16xf32> to vector<4x16xf32>
    %c0_25 = arith.constant 0 : index
    %c91 = arith.constant 91 : index
    %23 = vector.load %arg5[%c0_25, %c91] : memref<4x512xf32, #tpu.memory_space<vmem>>, vector<4x16xf32>
    tpu.vector_store %arg5[%c0_25, %c91], %22 {strides = array<i32>} : memref<4x512xf32, #tpu.memory_space<vmem>>, vector<4x16xf32>,
    %c0_26 = arith.constant 0 : index
    %c0_27 = arith.constant 0 : index
    %c5 = arith.constant 5 : index
    %c0_28 = arith.constant 0 : index
    %24 = vector.load %arg1[%c0_26, %c0_27, %c5, %c0_28] : memref<1x4x16x16xf32, #tpu.memory_space<vmem>>, vector<1x4x1x16xf32>
    %25 = vector.shape_cast %24 : vector<1x4x1x16xf32> to vector<4x1x16xf32>
    %26 = vector.shape_cast %25 : vector<4x1x16xf32> to vector<4x16xf32>
    %c0_29 = arith.constant 0 : index
    %c109 = arith.constant 109 : index
    %27 = vector.load %arg5[%c0_29, %c109] : memref<4x512xf32, #tpu.memory_space<vmem>>, vector<4x16xf32>
    tpu.vector_store %arg5[%c0_29, %c109], %26 {strides = array<i32>} : memref<4x512xf32, #tpu.memory_space<vmem>>, vector<4x16xf32>,
    %c0_30 = arith.constant 0 : index
    %c0_31 = arith.constant 0 : index
    %c6 = arith.constant 6 : index
    %c0_32 = arith.constant 0 : index
    %28 = vector.load %arg1[%c0_30, %c0_31, %c6, %c0_32] : memref<1x4x16x16xf32, #tpu.memory_space<vmem>>, vector<1x4x1x16xf32>
    %29 = vector.shape_cast %28 : vector<1x4x1x16xf32> to vector<4x1x16xf32>
    %30 = vector.shape_cast %29 : vector<4x1x16xf32> to vector<4x16xf32>
    %c0_33 = arith.constant 0 : index
    %c127 = arith.constant 127 : index
    %31 = vector.load %arg5[%c0_33, %c127] : memref<4x512xf32, #tpu.memory_space<vmem>>, vector<4x16xf32>
    tpu.vector_store %arg5[%c0_33, %c127], %30 {strides = array<i32>} : memref<4x512xf32, #tpu.memory_space<vmem>>, vector<4x16xf32>,
    %c0_34 = arith.constant 0 : index
    %c0_35 = arith.constant 0 : index
    %c7 = arith.constant 7 : index
    %c0_36 = arith.constant 0 : index
    %32 = vector.load %arg1[%c0_34, %c0_35, %c7, %c0_36] : memref<1x4x16x16xf32, #tpu.memory_space<vmem>>, vector<1x4x1x16xf32>
    %33 = vector.shape_cast %32 : vector<1x4x1x16xf32> to vector<4x1x16xf32>
    %34 = vector.shape_cast %33 : vector<4x1x16xf32> to vector<4x16xf32>
    %c0_37 = arith.constant 0 : index
    %c145 = arith.constant 145 : index
    %35 = vector.load %arg5[%c0_37, %c145] : memref<4x512xf32, #tpu.memory_space<vmem>>, vector<4x16xf32>
    tpu.vector_store %arg5[%c0_37, %c145], %34 {strides = array<i32>} : memref<4x512xf32, #tpu.memory_space<vmem>>, vector<4x16xf32>,
    %c0_38 = arith.constant 0 : index
    %c0_39 = arith.constant 0 : index
    %c8 = arith.constant 8 : index
    %c0_40 = arith.constant 0 : index
    %36 = vector.load %arg1[%c0_38, %c0_39, %c8, %c0_40] : memref<1x4x16x16xf32, #tpu.memory_space<vmem>>, vector<1x4x1x16xf32>
    %37 = vector.shape_cast %36 : vector<1x4x1x16xf32> to vector<4x1x16xf32>
    %38 = vector.shape_cast %37 : vector<4x1x16xf32> to vector<4x16xf32>
    %c0_41 = arith.constant 0 : index
    %c163 = arith.constant 163 : index
    %39 = vector.load %arg5[%c0_41, %c163] : memref<4x512xf32, #tpu.memory_space<vmem>>, vector<4x16xf32>
    tpu.vector_store %arg5[%c0_41, %c163], %38 {strides = array<i32>} : memref<4x512xf32, #tpu.memory_space<vmem>>, vector<4x16xf32>,
    %c0_42 = arith.constant 0 : index
    %c0_43 = arith.constant 0 : index
    %c9 = arith.constant 9 : index
    %c0_44 = arith.constant 0 : index
    %40 = vector.load %arg1[%c0_42, %c0_43, %c9, %c0_44] : memref<1x4x16x16xf32, #tpu.memory_space<vmem>>, vector<1x4x1x16xf32>
    %41 = vector.shape_cast %40 : vector<1x4x1x16xf32> to vector<4x1x16xf32>
    %42 = vector.shape_cast %41 : vector<4x1x16xf32> to vector<4x16xf32>
    %c0_45 = arith.constant 0 : index
    %c181 = arith.constant 181 : index
    %43 = vector.load %arg5[%c0_45, %c181] : memref<4x512xf32, #tpu.memory_space<vmem>>, vector<4x16xf32>
    tpu.vector_store %arg5[%c0_45, %c181], %42 {strides = array<i32>} : memref<4x512xf32, #tpu.memory_space<vmem>>, vector<4x16xf32>,
    %c0_46 = arith.constant 0 : index
    %c0_47 = arith.constant 0 : index
    %c10 = arith.constant 10 : index
    %c0_48 = arith.constant 0 : index
    %44 = vector.load %arg1[%c0_46, %c0_47, %c10, %c0_48] : memref<1x4x16x16xf32, #tpu.memory_space<vmem>>, vector<1x4x1x16xf32>
    %45 = vector.shape_cast %44 : vector<1x4x1x16xf32> to vector<4x1x16xf32>
    %46 = vector.shape_cast %45 : vector<4x1x16xf32> to vector<4x16xf32>
    %c0_49 = arith.constant 0 : index
    %c199 = arith.constant 199 : index
    %47 = vector.load %arg5[%c0_49, %c199] : memref<4x512xf32, #tpu.memory_space<vmem>>, vector<4x16xf32>
    tpu.vector_store %arg5[%c0_49, %c199], %46 {strides = array<i32>} : memref<4x512xf32, #tpu.memory_space<vmem>>, vector<4x16xf32>,
    %c0_50 = arith.constant 0 : index
    %c0_51 = arith.constant 0 : index
    %c11 = arith.constant 11 : index
    %c0_52 = arith.constant 0 : index
    %48 = vector.load %arg1[%c0_50, %c0_51, %c11, %c0_52] : memref<1x4x16x16xf32, #tpu.memory_space<vmem>>, vector<1x4x1x16xf32>
    %49 = vector.shape_cast %48 : vector<1x4x1x16xf32> to vector<4x1x16xf32>
    %50 = vector.shape_cast %49 : vector<4x1x16xf32> to vector<4x16xf32>
    %c0_53 = arith.constant 0 : index
    %c217 = arith.constant 217 : index
    %51 = vector.load %arg5[%c0_53, %c217] : memref<4x512xf32, #tpu.memory_space<vmem>>, vector<4x16xf32>
    tpu.vector_store %arg5[%c0_53, %c217], %50 {strides = array<i32>} : memref<4x512xf32, #tpu.memory_space<vmem>>, vector<4x16xf32>,
    %c0_54 = arith.constant 0 : index
    %c0_55 = arith.constant 0 : index
    %c12 = arith.constant 12 : index
    %c0_56 = arith.constant 0 : index
    %52 = vector.load %arg1[%c0_54, %c0_55, %c12, %c0_56] : memref<1x4x16x16xf32, #tpu.memory_space<vmem>>, vector<1x4x1x16xf32>
    %53 = vector.shape_cast %52 : vector<1x4x1x16xf32> to vector<4x1x16xf32>
    %54 = vector.shape_cast %53 : vector<4x1x16xf32> to vector<4x16xf32>
    %c0_57 = arith.constant 0 : index
    %c235 = arith.constant 235 : index
    %55 = vector.load %arg5[%c0_57, %c235] : memref<4x512xf32, #tpu.memory_space<vmem>>, vector<4x16xf32>
    tpu.vector_store %arg5[%c0_57, %c235], %54 {strides = array<i32>} : memref<4x512xf32, #tpu.memory_space<vmem>>, vector<4x16xf32>,
    %c0_58 = arith.constant 0 : index
    %c0_59 = arith.constant 0 : index
    %c13 = arith.constant 13 : index
    %c0_60 = arith.constant 0 : index
    %56 = vector.load %arg1[%c0_58, %c0_59, %c13, %c0_60] : memref<1x4x16x16xf32, #tpu.memory_space<vmem>>, vector<1x4x1x16xf32>
    %57 = vector.shape_cast %56 : vector<1x4x1x16xf32> to vector<4x1x16xf32>
    %58 = vector.shape_cast %57 : vector<4x1x16xf32> to vector<4x16xf32>
    %c0_61 = arith.constant 0 : index
    %c253 = arith.constant 253 : index
    %59 = vector.load %arg5[%c0_61, %c253] : memref<4x512xf32, #tpu.memory_space<vmem>>, vector<4x16xf32>
    tpu.vector_store %arg5[%c0_61, %c253], %58 {strides = array<i32>} : memref<4x512xf32, #tpu.memory_space<vmem>>, vector<4x16xf32>,
    %c0_62 = arith.constant 0 : index
    %c0_63 = arith.constant 0 : index
    %c14 = arith.constant 14 : index
    %c0_64 = arith.constant 0 : index
    %60 = vector.load %arg1[%c0_62, %c0_63, %c14, %c0_64] : memref<1x4x16x16xf32, #tpu.memory_space<vmem>>, vector<1x4x1x16xf32>
    %61 = vector.shape_cast %60 : vector<1x4x1x16xf32> to vector<4x1x16xf32>
    %62 = vector.shape_cast %61 : vector<4x1x16xf32> to vector<4x16xf32>
    %c0_65 = arith.constant 0 : index
    %c271 = arith.constant 271 : index
    %63 = vector.load %arg5[%c0_65, %c271] : memref<4x512xf32, #tpu.memory_space<vmem>>, vector<4x16xf32>
    tpu.vector_store %arg5[%c0_65, %c271], %62 {strides = array<i32>} : memref<4x512xf32, #tpu.memory_space<vmem>>, vector<4x16xf32>,
    %c0_66 = arith.constant 0 : index
    %c0_67 = arith.constant 0 : index
    %c15 = arith.constant 15 : index
    %c0_68 = arith.constant 0 : index
    %64 = vector.load %arg1[%c0_66, %c0_67, %c15, %c0_68] : memref<1x4x16x16xf32, #tpu.memory_space<vmem>>, vector<1x4x1x16xf32>
    %65 = vector.shape_cast %64 : vector<1x4x1x16xf32> to vector<4x1x16xf32>
    %66 = vector.shape_cast %65 : vector<4x1x16xf32> to vector<4x16xf32>
    %c0_69 = arith.constant 0 : index
    %c289 = arith.constant 289 : index
    %67 = vector.load %arg5[%c0_69, %c289] : memref<4x512xf32, #tpu.memory_space<vmem>>, vector<4x16xf32>
    tpu.vector_store %arg5[%c0_69, %c289], %66 {strides = array<i32>} : memref<4x512xf32, #tpu.memory_space<vmem>>, vector<4x16xf32>,
    %c0_70 = arith.constant 0 : index
    %c0_71 = arith.constant 0 : index
    %68 = vector.load %arg5[%c0_70, %c0_71] : memref<4x512xf32, #tpu.memory_space<vmem>>, vector<4x384xf32>
    %c0_72 = arith.constant 0 : index
    %c0_73 = arith.constant 0 : index
    %69 = vector.load %arg6[%c0_72, %c0_73] : memref<36x384xf32, #tpu.memory_space<vmem>>, vector<4x384xf32>
    tpu.vector_store %arg6[%c0_72, %c0_73], %68 {strides = array<i32>} : memref<36x384xf32, #tpu.memory_space<vmem>>, vector<4x384xf32>,
    %c0_74 = arith.constant 0 : index
    %c1_75 = arith.constant 1 : index
    %70 = vector.load %arg5[%c0_74, %c1_75] : memref<4x512xf32, #tpu.memory_space<vmem>>, vector<4x384xf32>
    %c4_76 = arith.constant 4 : index
    %c0_77 = arith.constant 0 : index
    %71 = vector.load %arg6[%c4_76, %c0_77] : memref<36x384xf32, #tpu.memory_space<vmem>>, vector<4x384xf32>
    tpu.vector_store %arg6[%c4_76, %c0_77], %70 {strides = array<i32>} : memref<36x384xf32, #tpu.memory_space<vmem>>, vector<4x384xf32>,
    %c0_78 = arith.constant 0 : index
    %c2_79 = arith.constant 2 : index
    %72 = vector.load %arg5[%c0_78, %c2_79] : memref<4x512xf32, #tpu.memory_space<vmem>>, vector<4x384xf32>
    %c8_80 = arith.constant 8 : index
    %c0_81 = arith.constant 0 : index
    %73 = vector.load %arg6[%c8_80, %c0_81] : memref<36x384xf32, #tpu.memory_space<vmem>>, vector<4x384xf32>
    tpu.vector_store %arg6[%c8_80, %c0_81], %72 {strides = array<i32>} : memref<36x384xf32, #tpu.memory_space<vmem>>, vector<4x384xf32>,
    %c0_82 = arith.constant 0 : index
    %c18 = arith.constant 18 : index
    %74 = vector.load %arg5[%c0_82, %c18] : memref<4x512xf32, #tpu.memory_space<vmem>>, vector<4x384xf32>
    %c12_83 = arith.constant 12 : index
    %c0_84 = arith.constant 0 : index
    %75 = vector.load %arg6[%c12_83, %c0_84] : memref<36x384xf32, #tpu.memory_space<vmem>>, vector<4x384xf32>
    tpu.vector_store %arg6[%c12_83, %c0_84], %74 {strides = array<i32>} : memref<36x384xf32, #tpu.memory_space<vmem>>, vector<4x384xf32>,
    %c0_85 = arith.constant 0 : index
    %c19_86 = arith.constant 19 : index
    %76 = vector.load %arg5[%c0_85, %c19_86] : memref<4x512xf32, #tpu.memory_space<vmem>>, vector<4x384xf32>
    %c16 = arith.constant 16 : index
    %c0_87 = arith.constant 0 : index
    %77 = vector.load %arg6[%c16, %c0_87] : memref<36x384xf32, #tpu.memory_space<vmem>>, vector<4x384xf32>
    tpu.vector_store %arg6[%c16, %c0_87], %76 {strides = array<i32>} : memref<36x384xf32, #tpu.memory_space<vmem>>, vector<4x384xf32>,
    %c0_88 = arith.constant 0 : index
    %c20 = arith.constant 20 : index
    %78 = vector.load %arg5[%c0_88, %c20] : memref<4x512xf32, #tpu.memory_space<vmem>>, vector<4x384xf32>
    %c20_89 = arith.constant 20 : index
    %c0_90 = arith.constant 0 : index
    %79 = vector.load %arg6[%c20_89, %c0_90] : memref<36x384xf32, #tpu.memory_space<vmem>>, vector<4x384xf32>
    tpu.vector_store %arg6[%c20_89, %c0_90], %78 {strides = array<i32>} : memref<36x384xf32, #tpu.memory_space<vmem>>, vector<4x384xf32>,
    %c0_91 = arith.constant 0 : index
    %c36 = arith.constant 36 : index
    %80 = vector.load %arg5[%c0_91, %c36] : memref<4x512xf32, #tpu.memory_space<vmem>>, vector<4x384xf32>
    %c24 = arith.constant 24 : index
    %c0_92 = arith.constant 0 : index
    %81 = vector.load %arg6[%c24, %c0_92] : memref<36x384xf32, #tpu.memory_space<vmem>>, vector<4x384xf32>
    tpu.vector_store %arg6[%c24, %c0_92], %80 {strides = array<i32>} : memref<36x384xf32, #tpu.memory_space<vmem>>, vector<4x384xf32>,
    %c0_93 = arith.constant 0 : index
    %c37_94 = arith.constant 37 : index
    %82 = vector.load %arg5[%c0_93, %c37_94] : memref<4x512xf32, #tpu.memory_space<vmem>>, vector<4x384xf32>
    %c28 = arith.constant 28 : index
    %c0_95 = arith.constant 0 : index
    %83 = vector.load %arg6[%c28, %c0_95] : memref<36x384xf32, #tpu.memory_space<vmem>>, vector<4x384xf32>
    tpu.vector_store %arg6[%c28, %c0_95], %82 {strides = array<i32>} : memref<36x384xf32, #tpu.memory_space<vmem>>, vector<4x384xf32>,
    %c0_96 = arith.constant 0 : index
    %c38 = arith.constant 38 : index
    %84 = vector.load %arg5[%c0_96, %c38] : memref<4x512xf32, #tpu.memory_space<vmem>>, vector<4x384xf32>
    %c32 = arith.constant 32 : index
    %c0_97 = arith.constant 0 : index
    %85 = vector.load %arg6[%c32, %c0_97] : memref<36x384xf32, #tpu.memory_space<vmem>>, vector<4x384xf32>
    tpu.vector_store %arg6[%c32, %c0_97], %84 {strides = array<i32>} : memref<36x384xf32, #tpu.memory_space<vmem>>, vector<4x384xf32>,
    %c0_98 = arith.constant 0 : index
    %c0_99 = arith.constant 0 : index
    %86 = vector.load %arg6[%c0_98, %c0_99] : memref<36x384xf32, #tpu.memory_space<vmem>>, vector<36x384xf32>
    %cst_100 = arith.constant dense<0.000000e+00> : vector<8x384xf32>
    %87 = tpu.matmul %0, %86, %cst_100 {dimension_numbers = #tpu.dot_dimension_numbers<[1], [0], [0], [1], [0, 0, 1, 1], [], []>} : vector<8x36xf32>, vector<36x384xf32>, vector<8x384xf32> -> vector<8x384xf32>
    %88 = vector.broadcast %1 : vector<8x1xf32> to vector<8x384xf32>
    %89 = arith.addf %87, %88 : vector<8x384xf32>
    %90 = vector.extract_strided_slice %89 {offsets = [0, 0], sizes = [8, 16], strides = [1, 1]} : vector<8x384xf32> to vector<8x16xf32>
    %91 = vector.extract_strided_slice %89 {offsets = [0, 18], sizes = [8, 16], strides = [1, 1]} : vector<8x384xf32> to vector<8x16xf32>
    %92 = vector.extract_strided_slice %89 {offsets = [0, 36], sizes = [8, 16], strides = [1, 1]} : vector<8x384xf32> to vector<8x16xf32>
    %93 = vector.extract_strided_slice %89 {offsets = [0, 54], sizes = [8, 16], strides = [1, 1]} : vector<8x384xf32> to vector<8x16xf32>
    %94 = vector.extract_strided_slice %89 {offsets = [0, 72], sizes = [8, 16], strides = [1, 1]} : vector<8x384xf32> to vector<8x16xf32>
    %95 = vector.extract_strided_slice %89 {offsets = [0, 90], sizes = [8, 16], strides = [1, 1]} : vector<8x384xf32> to vector<8x16xf32>
    %96 = vector.extract_strided_slice %89 {offsets = [0, 108], sizes = [8, 16], strides = [1, 1]} : vector<8x384xf32> to vector<8x16xf32>
    %97 = vector.extract_strided_slice %89 {offsets = [0, 126], sizes = [8, 16], strides = [1, 1]} : vector<8x384xf32> to vector<8x16xf32>
    %98 = vector.extract_strided_slice %89 {offsets = [0, 144], sizes = [8, 16], strides = [1, 1]} : vector<8x384xf32> to vector<8x16xf32>
    %99 = vector.extract_strided_slice %89 {offsets = [0, 162], sizes = [8, 16], strides = [1, 1]} : vector<8x384xf32> to vector<8x16xf32>
    %100 = vector.extract_strided_slice %89 {offsets = [0, 180], sizes = [8, 16], strides = [1, 1]} : vector<8x384xf32> to vector<8x16xf32>
    %101 = vector.extract_strided_slice %89 {offsets = [0, 198], sizes = [8, 16], strides = [1, 1]} : vector<8x384xf32> to vector<8x16xf32>
    %102 = vector.extract_strided_slice %89 {offsets = [0, 216], sizes = [8, 16], strides = [1, 1]} : vector<8x384xf32> to vector<8x16xf32>
    %103 = vector.extract_strided_slice %89 {offsets = [0, 234], sizes = [8, 16], strides = [1, 1]} : vector<8x384xf32> to vector<8x16xf32>
    %104 = vector.extract_strided_slice %89 {offsets = [0, 252], sizes = [8, 16], strides = [1, 1]} : vector<8x384xf32> to vector<8x16xf32>
    %105 = vector.extract_strided_slice %89 {offsets = [0, 270], sizes = [8, 16], strides = [1, 1]} : vector<8x384xf32> to vector<8x16xf32>
    %106 = vector.shape_cast %90 : vector<8x16xf32> to vector<8x1x16xf32>
    %107 = vector.shape_cast %91 : vector<8x16xf32> to vector<8x1x16xf32>
    %108 = vector.shape_cast %92 : vector<8x16xf32> to vector<8x1x16xf32>
    %109 = vector.shape_cast %93 : vector<8x16xf32> to vector<8x1x16xf32>
    %110 = vector.shape_cast %94 : vector<8x16xf32> to vector<8x1x16xf32>
    %111 = vector.shape_cast %95 : vector<8x16xf32> to vector<8x1x16xf32>
    %112 = vector.shape_cast %96 : vector<8x16xf32> to vector<8x1x16xf32>
    %113 = vector.shape_cast %97 : vector<8x16xf32> to vector<8x1x16xf32>
    %114 = vector.shape_cast %98 : vector<8x16xf32> to vector<8x1x16xf32>
    %115 = vector.shape_cast %99 : vector<8x16xf32> to vector<8x1x16xf32>
    %116 = vector.shape_cast %100 : vector<8x16xf32> to vector<8x1x16xf32>
    %117 = vector.shape_cast %101 : vector<8x16xf32> to vector<8x1x16xf32>
    %118 = vector.shape_cast %102 : vector<8x16xf32> to vector<8x1x16xf32>
    %119 = vector.shape_cast %103 : vector<8x16xf32> to vector<8x1x16xf32>
    %120 = vector.shape_cast %104 : vector<8x16xf32> to vector<8x1x16xf32>
    %121 = vector.shape_cast %105 : vector<8x16xf32> to vector<8x1x16xf32>
    %122 = tpu.concatenate %106, %107, %108, %109, %110, %111, %112, %113, %114, %115, %116, %117, %118, %119, %120, %121 in 1 : vector<8x1x16xf32>, vector<8x1x16xf32>, vector<8x1x16xf32>, vector<8x1x16xf32>, vector<8x1x16xf32>, vector<8x1x16xf32>, vector<8x1x16xf32>, vector<8x1x16xf32>, vector<8x1x16xf32>, vector<8x1x16xf32>, vector<8x1x16xf32>, vector<8x1x16xf32>, vector<8x1x16xf32>, vector<8x1x16xf32>, vector<8x1x16xf32>, vector<8x1x16xf32> -> vector<8x16x16xf32>
    %c0_101 = arith.constant 0 : index
    %c0_102 = arith.constant 0 : index
    %c0_103 = arith.constant 0 : index
    %c0_104 = arith.constant 0 : index
    %123 = vector.load %arg4[%c0_101, %c0_102, %c0_103, %c0_104] : memref<1x8x16x16xf32, #tpu.memory_space<vmem>>, vector<1x8x16x16xf32>
    %124 = vector.shape_cast %123 : vector<1x8x16x16xf32> to vector<8x16x16xf32>
    %125 = vector.shape_cast %122 : vector<8x16x16xf32> to vector<1x8x16x16xf32>
    tpu.vector_store %arg4[%c0_101, %c0_102, %c0_103, %c0_104], %125 {strides = array<i32>} : memref<1x8x16x16xf32, #tpu.memory_space<vmem>>, vector<1x8x16x16xf32>,
    return
  }
  func.func @transform_0(%arg0: i32) -> (i32, i32, i32, i32) {
    %c0_i32 = arith.constant 0 : i32
    %c0_i32_0 = arith.constant 0 : i32
    %c0_i32_1 = arith.constant 0 : i32
    %c0_i32_2 = arith.constant 0 : i32
    return %arg0, %c0_i32, %c0_i32_0, %c0_i32_1 : i32, i32, i32, i32
  }
  func.func @transform_1(%arg0: i32) -> (i32, i32) {
    %c0_i32 = arith.constant 0 : i32
    %c0_i32_0 = arith.constant 0 : i32
    %c0_i32_1 = arith.constant 0 : i32
    return %c0_i32, %c0_i32_0 : i32, i32
  }
  func.func @transform_2(%arg0: i32) -> (i32, i32) {
    %c0_i32 = arith.constant 0 : i32
    %c0_i32_0 = arith.constant 0 : i32
    %c0_i32_1 = arith.constant 0 : i32
    return %c0_i32, %c0_i32_0 : i32, i32
  }
  func.func @transform_3(%arg0: i32) -> (i32, i32, i32, i32) {
    %c0_i32 = arith.constant 0 : i32
    %c0_i32_0 = arith.constant 0 : i32
    %c0_i32_1 = arith.constant 0 : i32
    %c0_i32_2 = arith.constant 0 : i32
    return %arg0, %c0_i32, %c0_i32_0, %c0_i32_1 : i32, i32, i32, i32
  }
}

</mosaic_0001>

<bundles_post_ra>
// kernel: tpu_custom_call.1
= control target key start
LH: loop header
LB: loop body
LE: loop exit
PB: predicated region body
PF: predicated region fallthrough
CT: control target
= control target key end

     0   :  { %8 = vsyncpa [#allocation5], 0  ;;  %s3612_s0 = inlined_call_operand.hbm [shape: f32[2,4,16,16], index: 0, kind: input, shape index: {}]   ;;  %s3613_s1 = inlined_call_operand.vmem [shape: f32[8,36], index: 1, kind: input, shape index: {}]   ;;  %s3614_s2 = inlined_call_operand.vmem [shape: f32[8,1], index: 2, kind: input, shape index: {}]   ;;  %s3615_s3 = inlined_call_operand.hbm [shape: f32[2,8,16,16], index: 3, kind: output, shape index: {}]  }
   0x1   :  { %10 = vsyncpa [#allocation5 + $0x1], 0 }
   0x2   :  { %11 = vsyncpa [#allocation6], 0 }
   0x3   :  { %13 = vsyncpa [#allocation6 + $0x1], 0  ;;  %s2360_s12 = smov 0   ;;  %s2362_s13 = smov 0  }
   0x4   :  { %s2364_s14 = smov 0   ;;  %s2366_s15 = smov 0  }
   0x5 LB: > { %s2381_s16 = sadd.s32 4294967295, %s2293_s15   ;;  %s2049_s17 = sadd.s32 4294967294, %s2293_s15   ;;  %s2293_s15 = sphi %s2366_s15, %s3666_s15   ;;  %s2289_s14 = sphi %s2364_s14, %s3665_s14   ;;  %s2285_s13 = sphi %s2362_s13, %s3664_s13   ;;  %s2281_s12 = sphi %s2360_s12, %s3663_s12  }
   0x6   : > { %s2385_s18 = sadd.s32 1, %s2293_s15   ;;  %s26_s19 = sadd.s32 1, %s2289_s14 }
   0x7   : > { %s23_s20 = ssub.s32 %s2293_s15, %s2385_s18  ;;  %p33_p0 = scmp.ne.s32.totalorder %s2289_s14, %s2285_s13 }
   0x8   : > { %p24_p1 = scmp.eq.s32.totalorder %s23_s20, 0  ;;  %p34_p2 = scmp.eq.s32.totalorder %s2293_s15, 0 }
   0x9   : > { %p39_p3 = scmp.ne.s32.totalorder %s2285_s13, %s2281_s12  ;;  %p40_p4 = scmp.eq.s32.totalorder %s2381_s16, 0 }
   0xa   : > { %s2397_s21 = scalar_select %p24_p1, %s2289_s14, %s26_s19  }
   0xb   : > { %p2399_p5 = por %p34_p2, %p33_p0  ;;  %p2403_p6 = por %p40_p4, %p39_p3 }
   0xc   : > { %p105_p7 = scmp.eq.s32.totalorder %s2381_s16, 1  ;;  %p111_p8 = scmp.eq.s32.totalorder %s2049_s17, 1 }
   0xd   : > { %p2115_p10 = scmp.lt.s32.totalorder %s2293_s15, 2  ;;  %s137_s26 = sand.u32 1, %s2289_s14  }
   0xe   : > { %p2410_p11 = por %p105_p7, %p33_p0  ;;  %p2414_p12 = por %p111_p8, %p39_p3 }
   0xf   : > { %s2068_s27 = sshll.u32 %s2293_s15, 10  ;;  %s2052_s28 = sshll.u32 %s137_s26, 6 }
  0x10   : > { %s3619_s24 = scalar_select %p2410_p11, 1, 0 }
  0x11   : > { %s3620_s25 = scalar_select %p2414_p12, 1, 0 }
  0x12   : > { %s2423_s4 = scalar_lea.hbm %s3612_s0, %s2068_s27  ;;  %s141_s5 = scalar_lea.vmem [#allocation4], %s2052_s28 }
  0x13   : > { %s148_s6 = sshll.u32 %s141_s5, 4  ;;  %p2427_p13 = pnand %p2115_p10, %p2399_p5  ;;  %s2431_s6 = int_to_ptr.vmem [resolvable:$true] %s148_s6 }
  0x14   : > { %s2433_s8 = scalar_lea.sflag [#allocation5], %s137_s26  ;;  %s2197_s9 = scalar_lea.hbm %s2423_s4, 1024 }
  0x15   : > { %p2198_p0 = scmp.ne.s32.totalorder %s2423_s4, %s2197_s9  ;;  %p2199_p1 = pneg %p2427_p13 }
  0x16   : > { %s2202_s17 = scalar_lea.hbm %s3612_s0, 2048  ;;  %p2203_p4 = scmp.lt.u32.totalorder %s2423_s4, %s3612_s0 }
  0x17   : > { %p2200_p2 = pnand %p2199_p1, %p2198_p0  ;;  %p2204_p5 = scmp.lt.u32.totalorder %s2202_s17, %s2197_s9 }
  0x18   : > { %p2206_p8 = scmp.lt.u32.totalorder %s2197_s9, %s2423_s4 }
  0x19   : > { %p2201_p3 = pneg %p2200_p2  ;;  %p2205_p7 = por %p2204_p5, %p2203_p4 }
  0x1b   : > { %p2207_p10 = por %p2206_p8, %p2205_p7 }
  0x1d   : > { %p2208_p9 = pnand %p2207_p10, %p2201_p3 }
  0x1f   : > { %2211 = shalt.err (!%p2208_p9)
}
  0x20   : > { %s2212_s22 = scalar_lea.vmem %s2431_s6, 1024  ;;  %s2295_s26 = smov [#allocation4]  }
  0x21   : > { %p2213_p0 = scmp.ne.s32.totalorder %s2431_s6, %s2212_s22  ;;  %s2217_s27 = sshll.u32 %s2295_s26, 4  ;;  %s2218_s27 = int_to_ptr.vmem [resolvable:$false] %s2217_s27 }
  0x22   : > { %s2219_s28 = scalar_lea.vmem %s2218_s27, 2048  ;;  %p2220_p11 = scmp.lt.s32.totalorder %s2431_s6, %s2218_s27 }
  0x23   : > { %p2215_p2 = pnand %p2213_p0, %p2199_p1  ;;  %p2221_p4 = scmp.lt.s32.totalorder %s2219_s28, %s2212_s22 }
  0x25   : > { %p2216_p12 = pneg %p2215_p2  ;;  %p2222_p5 = por %p2221_p4, %p2220_p11 }
  0x27   : > { %p2223_p7 = pnand %p2222_p5, %p2216_p12 }
  0x29   : > { %2226 = shalt.err (!%p2223_p7)
}
  0x2a   : > { %s2296_s29 = smov 128   ;;  %s2297_s30 = smov 8  }
  0x2b   : > { %2110 = dma.hbm_to_vmem [thread:$0]  (!%p2427_p13), %s2423_s4, 1024, %s2431_s6, %s2433_s8, %s2296_s29, %s2296_s29, %s2297_s30  }
  0x2c   : > { %p2055_p9 = scmp.ge.s32.totalorder %s2293_s15, 1  ;;  %p156_p1 = scmp.lt.s32.totalorder %s2293_s15, 3 }
  0x2e   : > { %p157_p3 = pnand %p2055_p9, %p156_p1 }
  0x30   : > { %160 = sbr.rel (%p157_p3) target bundleno = 1031 (0x407), region = 32 }
  0x37   : > { %s2464_s5 = sand.u32 1, %s2285_s13  }
  0x38   : > { %s2056_s9 = sshll.u32 %s2464_s5, 6  ;;  %s163_s10 = scalar_lea.sflag [#allocation5], %s2464_s5 }
  0x39   : > { %s2468_s11 = scalar_lea.vmem [#allocation4], %s2056_s9 }
  0x3a   : > { %2272 = dma.done.wait (%p2403_p6), %s163_s10, 1024  }
  0x3b   : > { %2274 = vsyncadd (%p2403_p6), %s163_s10, 4294966272  ;;  %v2298_v0 = vmov 0.0   ;;  %vm202_vm0 = vcmask 1041409   ;;  %vm204_vm1 = vcmask 1045509   ;;  %vm207_vm2 = vcmask 1042434   ;;  %s2299_s23 = smov 55  }
  0x3c   : > { %191 = vst [vmem:[#allocation2] sm:$0xff] %v2298_v0  ;;  %192 = vst [vmem:[#allocation2 + $0x8] sm:$0xff] %v2298_v0  ;;  %858 = vmatprep.mubr.f32.mxu0 %v2298_v0  ;;  %vm209_vm3 = vcmask 1046534   ;;  %v243_v1 = vld [vmem:[%s2468_s11 + $0x2] sm:$0x1]  ;;  %vm212_vm4 = vcmask 1043459  }
  0x3d   : > { %v244_v2 = vld [vmem:[%s2468_s11 + $0x12] sm:$0x1]  ;;  %v245_v3 = vld [vmem:[%s2468_s11 + $0x22] sm:$0x1]  ;;  %v193_v7 = vld [vmem:[%s2468_s11] sm:$0x1] }
  0x3e   : > { %v246_v4 = vld [vmem:[%s2468_s11 + $0x32] sm:$0x1]  ;;  %v251_v5 = vrot.slane %v244_v2, 7  ;;  %v254_v6 = vrot.slane %v245_v3, 6  ;;  %v194_v9 = vld [vmem:[%s2468_s11 + $0x10] sm:$0x1] }
  0x3f   : > { %v257_v8 = vrot.slane %v246_v4, 5  ;;  %v195_v10 = vld [vmem:[%s2468_s11 + $0x20] sm:$0x1]  ;;  %v196_v12 = vld [vmem:[%s2468_s11 + $0x30] sm:$0x1]  ;;  %v201_v13 = vrot.slane %v194_v9, 7 }
  0x40   : > { %v252_v11 = vsel %vm202_vm0, %v251_v5, %v243_v1  ;;  %v206_v14 = vrot.slane %v195_v10, 6  ;;  %v265_v15 = vld [vmem:[%s2468_s11 + $0x3] sm:$0x1]  ;;  %vm214_vm5 = vcmask 1047559   ;;  %v211_v17 = vrot.slane %v196_v12, 5  ;;  %s2300_s4 = smov 19  }
  0x41   : > { %v253_v16 = vsel %vm204_vm1, %v251_v5, %v252_v11  ;;  %v266_v18 = vld [vmem:[%s2468_s11 + $0x13] sm:$0x1]  ;;  %v267_v19 = vld [vmem:[%s2468_s11 + $0x23] sm:$0x1]  ;;  %v203_v21 = vsel %vm202_vm0, %v201_v13, %v193_v7  ;;  %v221_v25 = vld [vmem:[%s2468_s11 + $0x1] sm:$0x1] }
  0x42   : > { %v255_v20 = vsel %vm207_vm2, %v254_v6, %v253_v16  ;;  %v268_v22 = vld [vmem:[%s2468_s11 + $0x33] sm:$0x1]  ;;  %v273_v23 = vrot.slane %v266_v18, 7  ;;  %v276_v24 = vrot.slane %v267_v19, 6  ;;  %v205_v27 = vsel %vm204_vm1, %v201_v13, %v203_v21  ;;  %v222_v29 = vld [vmem:[%s2468_s11 + $0x11] sm:$0x1] }
  0x43   : > { %v256_v26 = vsel %vm209_vm3, %v254_v6, %v255_v20  ;;  %v279_v28 = vrot.slane %v268_v22, 5  ;;  %v223_v30 = vld [vmem:[%s2468_s11 + $0x21] sm:$0x1]  ;;  %v208_v32 = vsel %vm207_vm2, %v206_v14, %v205_v27  ;;  %v224_v34 = vld [vmem:[%s2468_s11 + $0x31] sm:$0x1]  ;;  %v229_v35 = vrot.slane %v222_v29, 7 }
  0x44   : > { %v258_v31 = vsel %vm212_vm4, %v257_v8, %v256_v26  ;;  %v274_v33 = vsel %vm202_vm0, %v273_v23, %v265_v15  ;;  %v210_v37 = vsel %vm209_vm3, %v206_v14, %v208_v32  ;;  %v232_v39 = vrot.slane %v223_v30, 6  ;;  %v288_v40 = vld [vmem:[%s2468_s11 + $0x14] sm:$0x1]  ;;  %v289_v41 = vld [vmem:[%s2468_s11 + $0x24] sm:$0x1]  ;;  %s2301_s6 = smov 73  }
  0x45   : > { %v259_v36 = vsel %vm214_vm5, %v257_v8, %v258_v31  ;;  %v275_v38 = vsel %vm204_vm1, %v273_v23, %v274_v33  ;;  %v213_v42 = vsel %vm212_vm4, %v211_v17, %v210_v37  ;;  %v230_v44 = vsel %vm202_vm0, %v229_v35, %v221_v25  ;;  %v287_v46 = vld [vmem:[%s2468_s11 + $0x4] sm:$0x1]  ;;  %v290_v47 = vld [vmem:[%s2468_s11 + $0x34] sm:$0x1]  ;;  %v332_v52 = vld [vmem:[%s2468_s11 + $0x16] sm:$0x1] }
  0x46   : > { %260 = vrot.lane.b32.xlu1 %v259_v36, %s2299_s23  ;;  %v277_v43 = vsel %vm207_vm2, %v276_v24, %v275_v38  ;;  %v235_v45 = vrot.slane %v224_v34, 5  ;;  %v215_v48 = vsel %vm214_vm5, %v211_v17, %v213_v42  ;;  %v231_v50 = vsel %vm204_vm1, %v229_v35, %v230_v44  ;;  %v333_v53 = vld [vmem:[%s2468_s11 + $0x26] sm:$0x1]  ;;  %v334_v59 = vld [vmem:[%s2468_s11 + $0x36] sm:$0x1]  ;;  %s2302_s7 = smov 37  }
  0x47   : > { %v278_v49 = vsel %vm209_vm3, %v276_v24, %v277_v43  ;;  %v295_v51 = vrot.slane %v288_v40, 7  ;;  %216 = vrot.lane.b32.xlu0 %v215_v48, %s2300_s4  ;;  %v233_v55 = vsel %vm207_vm2, %v232_v39, %v231_v50  ;;  %v298_v56 = vrot.slane %v289_v41, 6  ;;  %v331_v58 = vld [vmem:[%s2468_s11 + $0x6] sm:$0x1]  ;;  %v359_v1 = vld [vmem:[%s2468_s11 + $0x17] sm:$0x1] }
  0x48   : > { %v280_v54 = vsel %vm212_vm4, %v279_v28, %v278_v49  ;;  %v301_v57 = vrot.slane %v290_v47, 5  ;;  %v234_v61 = vsel %vm209_vm3, %v232_v39, %v233_v55  ;;  %v339_v63 = vrot.slane %v332_v52, 7  ;;  %v360_v2 = vld [vmem:[%s2468_s11 + $0x27] sm:$0x1]  ;;  %v361_v8 = vld [vmem:[%s2468_s11 + $0x37] sm:$0x1] }
  0x49   : > { %v281_v60 = vsel %vm214_vm5, %v279_v28, %v280_v54  ;;  %v296_v62 = vsel %vm202_vm0, %v295_v51, %v287_v46  ;;  %v236_v3 = vsel %vm212_vm4, %v235_v45, %v234_v61  ;;  %v342_v5 = vrot.slane %v333_v53, 6  ;;  %v358_v7 = vld [vmem:[%s2468_s11 + $0x7] sm:$0x1]  ;;  %v310_v13 = vld [vmem:[%s2468_s11 + $0x15] sm:$0x1]  ;;  %s2303_s8 = smov 91  }
  0x4a   : > { %282 = vrot.lane.b32.xlu1 %v281_v60, %s2301_s6  ;;  %v297_v4 = vsel %vm204_vm1, %v295_v51, %v296_v62  ;;  %v345_v6 = vrot.slane %v334_v59, 5  ;;  %v237_v9 = vsel %vm214_vm5, %v235_v45, %v236_v3  ;;  %v340_v11 = vsel %vm202_vm0, %v339_v63, %v331_v58  ;;  %v311_v14 = vld [vmem:[%s2468_s11 + $0x25] sm:$0x1]  ;;  %v312_v20 = vld [vmem:[%s2468_s11 + $0x35] sm:$0x1]  ;;  %s2304_s17 = smov 127  }
  0x4b   : > { %v299_v10 = vsel %vm207_vm2, %v298_v56, %v297_v4  ;;  %v366_v12 = vrot.slane %v359_v1, 7  ;;  %238 = vrot.lane.b32.xlu0 %v237_v9, %s2302_s7  ;;  %v341_v16 = vsel %vm204_vm1, %v339_v63, %v340_v11  ;;  %v369_v17 = vrot.slane %v360_v2, 6  ;;  %v309_v19 = vld [vmem:[%s2468_s11 + $0x5] sm:$0x1]  ;;  %v403_v25 = vld [vmem:[%s2468_s11 + $0x19] sm:$0x1] }
  0x4c   : > { %v300_v15 = vsel %vm209_vm3, %v298_v56, %v299_v10  ;;  %v372_v18 = vrot.slane %v361_v8, 5  ;;  %v343_v22 = vsel %vm207_vm2, %v342_v5, %v341_v16  ;;  %v317_v24 = vrot.slane %v310_v13, 7  ;;  %v404_v30 = vld [vmem:[%s2468_s11 + $0x29] sm:$0x1]  ;;  %v405_v31 = vld [vmem:[%s2468_s11 + $0x39] sm:$0x1] }
  0x4d   : > { %v302_v21 = vsel %vm212_vm4, %v301_v57, %v300_v15  ;;  %v367_v23 = vsel %vm202_vm0, %v366_v12, %v358_v7  ;;  %v344_v27 = vsel %vm209_vm3, %v342_v5, %v343_v22  ;;  %v320_v29 = vrot.slane %v311_v14, 6  ;;  %v402_v36 = vld [vmem:[%s2468_s11 + $0x9] sm:$0x1]  ;;  %v381_v37 = vld [vmem:[%s2468_s11 + $0x18] sm:$0x1]  ;;  %s2305_s19 = smov 17  }
  0x4e   : > { %v303_v26 = vsel %vm214_vm5, %v301_v57, %v302_v21  ;;  %v368_v28 = vsel %vm204_vm1, %v366_v12, %v367_v23  ;;  %v346_v32 = vsel %vm212_vm4, %v345_v6, %v344_v27  ;;  %v318_v34 = vsel %vm202_vm0, %v317_v24, %v309_v19  ;;  %v382_v42 = vld [vmem:[%s2468_s11 + $0x28] sm:$0x1]  ;;  %v383_v43 = vld [vmem:[%s2468_s11 + $0x38] sm:$0x1]  ;;  %v491_v49 = vld [vmem:[%s2468_s11 + $0x1d] sm:$0x1] }
  0x4f   : > { %304 = vrot.lane.b32.xlu1 %v303_v26, %s2303_s8  ;;  %v370_v33 = vsel %vm207_vm2, %v369_v17, %v368_v28  ;;  %v323_v35 = vrot.slane %v312_v20, 5  ;;  %v347_v38 = vsel %vm214_vm5, %v345_v6, %v346_v32  ;;  %v319_v40 = vsel %vm204_vm1, %v317_v24, %v318_v34  ;;  %v380_v48 = vld [vmem:[%s2468_s11 + $0x8] sm:$0x1]  ;;  %v492_v54 = vld [vmem:[%s2468_s11 + $0x2d] sm:$0x1]  ;;  %s2306_s20 = smov 109  }
  0x50   : > { %v371_v39 = vsel %vm209_vm3, %v369_v17, %v370_v33  ;;  %v410_v41 = vrot.slane %v403_v25, 7  ;;  %348 = vrot.lane.b32.xlu0 %v347_v38, %s2304_s17  ;;  %v321_v45 = vsel %vm207_vm2, %v320_v29, %v319_v40  ;;  %v413_v46 = vrot.slane %v404_v30, 6  ;;  %v493_v55 = vld [vmem:[%s2468_s11 + $0x3d] sm:$0x1]  ;;  %v490_v60 = vld [vmem:[%s2468_s11 + $0xd] sm:$0x1] }
  0x51   : > { %v373_v44 = vsel %vm212_vm4, %v372_v18, %v371_v39  ;;  %v416_v47 = vrot.slane %v405_v31, 5  ;;  %v322_v51 = vsel %vm209_vm3, %v320_v29, %v321_v45  ;;  %v388_v53 = vrot.slane %v381_v37, 7  ;;  %v425_v61 = vld [vmem:[%s2468_s11 + $0x1a] sm:$0x1]  ;;  %v426_v3 = vld [vmem:[%s2468_s11 + $0x2a] sm:$0x1] }
  0x52   : > { %v374_v50 = vsel %vm214_vm5, %v372_v18, %v373_v44  ;;  %v411_v52 = vsel %vm202_vm0, %v410_v41, %v402_v36  ;;  %v324_v56 = vsel %vm212_vm4, %v323_v35, %v322_v51  ;;  %v391_v58 = vrot.slane %v382_v42, 6  ;;  %v424_v8 = vld [vmem:[%s2468_s11 + $0xa] sm:$0x1]  ;;  %v427_v9 = vld [vmem:[%s2468_s11 + $0x3a] sm:$0x1]  ;;  %s2307_s22 = smov 53  }
  0x53   : > { %375 = vrot.lane.b32.xlu1 %v374_v50, %s2305_s19  ;;  %v412_v57 = vsel %vm204_vm1, %v410_v41, %v411_v52  ;;  %v394_v59 = vrot.slane %v383_v43, 5  ;;  %v325_v62 = vsel %vm214_vm5, %v323_v35, %v324_v56  ;;  %v389_v1 = vsel %vm202_vm0, %v388_v53, %v380_v48  ;;  %v447_v14 = vld [vmem:[%s2468_s11 + $0x1b] sm:$0x1]  ;;  %v448_v19 = vld [vmem:[%s2468_s11 + $0x2b] sm:$0x1]  ;;  %s2308_s26 = smov 35  }
  0x54   : > { %v414_v63 = vsel %vm207_vm2, %v413_v46, %v412_v57  ;;  %v498_v2 = vrot.slane %v491_v49, 7  ;;  %326 = vrot.lane.b32.xlu0 %v325_v62, %s2306_s20  ;;  %v390_v5 = vsel %vm204_vm1, %v388_v53, %v389_v1  ;;  %v501_v6 = vrot.slane %v492_v54, 6  ;;  %v449_v20 = vld [vmem:[%s2468_s11 + $0x3b] sm:$0x1]  ;;  %v446_v25 = vld [vmem:[%s2468_s11 + $0xb] sm:$0x1] }
  0x55   : > { %v415_v4 = vsel %vm209_vm3, %v413_v46, %v414_v63  ;;  %v504_v7 = vrot.slane %v493_v55, 5  ;;  %v392_v11 = vsel %vm207_vm2, %v391_v58, %v390_v5  ;;  %v432_v13 = vrot.slane %v425_v61, 7  ;;  %v469_v26 = vld [vmem:[%s2468_s11 + $0x1c] sm:$0x1]  ;;  %v470_v31 = vld [vmem:[%s2468_s11 + $0x2c] sm:$0x1] }
  0x56   : > { %v417_v10 = vsel %vm212_vm4, %v416_v47, %v415_v4  ;;  %v499_v12 = vsel %vm202_vm0, %v498_v2, %v490_v60  ;;  %v393_v16 = vsel %vm209_vm3, %v391_v58, %v392_v11  ;;  %v435_v18 = vrot.slane %v426_v3, 6  ;;  %v471_v32 = vld [vmem:[%s2468_s11 + $0x3c] sm:$0x1]  ;;  %v468_v37 = vld [vmem:[%s2468_s11 + $0xc] sm:$0x1]  ;;  %s2309_s27 = smov 125  }
  0x57   : > { %v418_v15 = vsel %vm214_vm5, %v416_v47, %v417_v10  ;;  %v500_v17 = vsel %vm204_vm1, %v498_v2, %v499_v12  ;;  %v395_v21 = vsel %vm212_vm4, %v394_v59, %v393_v16  ;;  %v433_v23 = vsel %vm202_vm0, %v432_v13, %v424_v8  ;;  %v518_v38 = vld [vmem:[%s2468_s11 + $0x1e] sm:$0x1]  ;;  %v519_v43 = vld [vmem:[%s2468_s11 + $0x2e] sm:$0x1]  ;;  %v540_v50 = vld [vmem:[%s2468_s11 + $0x1f] sm:$0x1] }
  0x58   : > { %419 = vrot.lane.b32.xlu1 %v418_v15, %s2307_s22  ;;  %v502_v22 = vsel %vm207_vm2, %v501_v6, %v500_v17  ;;  %v438_v24 = vrot.slane %v427_v9, 5  ;;  %v396_v27 = vsel %vm214_vm5, %v394_v59, %v395_v21  ;;  %v434_v29 = vsel %vm204_vm1, %v432_v13, %v433_v23  ;;  %v520_v44 = vld [vmem:[%s2468_s11 + $0x3e] sm:$0x1]  ;;  %v517_v49 = vld [vmem:[%s2468_s11 + $0xe] sm:$0x1]  ;;  %s2310_s28 = smov 71  }
  0x59   : > { %v503_v28 = vsel %vm209_vm3, %v501_v6, %v502_v22  ;;  %v454_v30 = vrot.slane %v447_v14, 7  ;;  %397 = vrot.lane.b32.xlu0 %v396_v27, %s2308_s26  ;;  %v436_v34 = vsel %vm207_vm2, %v435_v18, %v434_v29  ;;  %v457_v35 = vrot.slane %v448_v19, 6  ;;  %v541_v55 = vld [vmem:[%s2468_s11 + $0x2f] sm:$0x1]  ;;  %v542_v61 = vld [vmem:[%s2468_s11 + $0x3f] sm:$0x1] }
  0x5a   : > { %v505_v33 = vsel %vm212_vm4, %v504_v7, %v503_v28  ;;  %v460_v36 = vrot.slane %v449_v20, 5  ;;  %v437_v40 = vsel %vm209_vm3, %v435_v18, %v436_v34  ;;  %v476_v42 = vrot.slane %v469_v26, 7  ;;  %v539_v60 = vld [vmem:[%s2468_s11 + $0xf] sm:$0x1]  ;;  %s2311_s29 = smov 89   ;;  %s2312_s30 = smov 107  }
  0x5b   : > { %v506_v39 = vsel %vm214_vm5, %v504_v7, %v505_v33  ;;  %v455_v41 = vsel %vm202_vm0, %v454_v30, %v446_v25  ;;  %v439_v45 = vsel %vm212_vm4, %v438_v24, %v437_v40  ;;  %v479_v47 = vrot.slane %v470_v31, 6  ;;  %s2313_s9 = smov 15   ;;  %s2314_s10 = smov 33  }
  0x5c   : > { %507 = vrot.lane.b32.xlu1 %v506_v39, %s2309_s27  ;;  %v456_v46 = vsel %vm204_vm1, %v454_v30, %v455_v41  ;;  %v482_v48 = vrot.slane %v471_v32, 5  ;;  %v440_v51 = vsel %vm214_vm5, %v438_v24, %v439_v45  ;;  %v477_v53 = vsel %vm202_vm0, %v476_v42, %v468_v37  ;;  %s2315_s11 = smov 126   ;;  %s2316_s23 = smov 108  }
  0x5d   : > { %v458_v52 = vsel %vm207_vm2, %v457_v35, %v456_v46  ;;  %v525_v54 = vrot.slane %v518_v38, 7  ;;  %441 = vrot.lane.b32.xlu0 %v440_v51, %s2310_s28  ;;  %v478_v57 = vsel %vm204_vm1, %v476_v42, %v477_v53  ;;  %v528_v58 = vrot.slane %v519_v43, 6  ;;  %s2317_s4 = smov 110   ;;  %s2318_s6 = smov 92  }
  0x5e   : > { %v459_v56 = vsel %vm209_vm3, %v457_v35, %v458_v52  ;;  %v531_v59 = vrot.slane %v520_v44, 5  ;;  %v480_v63 = vsel %vm207_vm2, %v479_v47, %v478_v57  ;;  %v547_v2 = vrot.slane %v540_v50, 7  ;;  %s2319_s7 = smov 90   ;;  %s2324_s22 = smov 114  }
  0x5f   : > { %v461_v62 = vsel %vm212_vm4, %v460_v36, %v459_v56  ;;  %v526_v1 = vsel %vm202_vm0, %v525_v54, %v517_v49  ;;  %v481_v4 = vsel %vm209_vm3, %v479_v47, %v480_v63  ;;  %v550_v6 = vrot.slane %v541_v55, 6  ;;  %v190_v49 = vld [vmem:[%s3614_s2] sm:$0xff]  ;;  %s2325_s26 = smov 74   ;;  %s2326_s27 = smov 56  }
  0x60   : > { %v462_v3 = vsel %vm214_vm5, %v460_v36, %v461_v62  ;;  %v527_v5 = vsel %vm204_vm1, %v525_v54, %v526_v1  ;;  %v483_v7 = vsel %vm212_vm4, %v482_v48, %v481_v4  ;;  %v548_v9 = vsel %vm202_vm0, %v547_v2, %v539_v60  ;;  %s2327_s28 = smov 38   ;;  %s2336_s19 = smov 4  }
  0x61   : > { %v529_v8 = vsel %vm207_vm2, %v528_v58, %v527_v5  ;;  %v553_v10 = vrot.slane %v542_v61, 5  ;;  %463 = vrot.lane.b32.xlu0 %v462_v3, %s2311_s29  ;;  %v484_v11 = vsel %vm214_vm5, %v482_v48, %v483_v7  ;;  %v549_v13 = vsel %vm204_vm1, %v547_v2, %v548_v9  ;;  %s2328_s29 = smov 20   ;;  %p3660_p11 = scmp.ne.s32.totalorder %s3619_s24, 0 }
  0x62   : > { %v530_v12 = vsel %vm209_vm3, %v528_v58, %v529_v8  ;;  %485 = vrot.lane.b32.xlu1 %v484_v11, %s2312_s30  ;;  %v551_v15 = vsel %vm207_vm2, %v550_v6, %v549_v13  ;;  %vm219_vm6 = vcmask 281752   ;;  %vm241_vm7 = vcmask 429352   ;;  %s2329_s30 = smov 112  }
  0x63   : > { %v532_v14 = vsel %vm212_vm4, %v531_v59, %v530_v12  ;;  %v552_v17 = vsel %vm209_vm3, %v550_v6, %v551_v15  ;;  %vm263_vm8 = vcmask 576952   ;;  %vm285_vm9 = vcmask 724552  }
  0x64   : > { %v533_v16 = vsel %vm214_vm5, %v531_v59, %v532_v14  ;;  %v554_v18 = vsel %vm212_vm4, %v553_v10, %v552_v17  ;;  %vm307_vm10 = vcmask 872152   ;;  %vm354_vm11 = vcmask 1044472  }
  0x65   : > { %534 = vrot.lane.b32.xlu0 %v533_v16, %s2313_s9  ;;  %v555_v19 = vsel %vm214_vm5, %v553_v10, %v554_v18  ;;  %vm355_vm12 = vcmask 121860   ;;  %vm351_vm13 = vcmask 1039360   ;;  %vm329_vm14 = vcmask 1019752   ;;  %s2330_s9 = smov 94  }
  0x66   : > { %556 = vrot.lane.b32.xlu1 %v555_v19, %s2314_s10  ;;  %vm356_vm15 = vmor %vm355_vm12, %vm354_vm11  ;;  %vm378_vm0 = vcmask 265352   ;;  %vm400_vm1 = vcmask 412952   ;;  %vm422_vm2 = vcmask 560552   ;;  %vm444_vm3 = vcmask 708152   ;;  %s2331_s10 = smov 2  }
  0x67   : > { %vm513_vm4 = vcmask 1044456   ;;  %vm514_vm5 = vcmask 105476   ;;  %vm559_vm11 = vcmask 396552   ;;  %v2320_v46 = vmov 0.0|0.0  }
  0x68   : > { %2097 = vmatprep.subr.bf16.mxu1 %v2320_v46  ;;  %vm2321_vm12 = vmmov 0   ;;  %v2322_v48 = vmov 0  }
  0x69   : > { %2086 = vmatprep.mubr.msk.f32.mxu1 %vm2321_vm12, %v2298_v0  ;;  %2192 = vset.pattern.permute.xlu0 %v2322_v48  ;;  %vm1880_vm12 = vcmask 1046528  }
  0xb8   : > { %v261_v20 = vpop.permute.xlu1 %260 }
  0xb9   : > { %v217_v21 = vpop.permute.xlu0 %216 }
  0xba   : > { %220 = vst.msk [vmem:[#allocation2] sm:$0xf] %vm219_vm6, %v217_v21  ;;  %vm466_vm6 = vcmask 855752  }
  0xbc   : > { %v283_v22 = vpop.permute.xlu1 %282 }
  0xbd   : > { %v239_v23 = vpop.permute.xlu0 %238 }
  0xbe   : > { %242 = vst.msk [vmem:[#allocation2] sm:$0xf] %vm241_vm7, %v239_v23  ;;  %vm510_vm7 = vcmask 1022976  }
  0xbf   : > { %264 = vst.msk [vmem:[#allocation2] sm:$0xf] %vm263_vm8, %v261_v20  ;;  %vm488_vm8 = vcmask 1003352  }
  0xc0   : > { %286 = vst.msk [vmem:[#allocation2] sm:$0xf] %vm285_vm9, %v283_v22  ;;  %vm515_vm9 = vmor %vm514_vm5, %vm513_vm4  ;;  %vm784_vm4 = vcmask 1043456   ;;  %vm780_vm5 = vcmask 293888  }
  0xc1   : > { %v305_v24 = vpop.permute.xlu1 %304 }
  0xc2   : > { %308 = vst.msk [vmem:[#allocation2] sm:$0xf] %vm307_vm10, %v305_v24  ;;  %v349_v25 = vpop.permute.xlu0 %348  ;;  %vm537_vm10 = vcmask 248952  }
  0xc3   : > { %v350_v26 = vrot.slane %v349_v25, 4 }
  0xc5   : > { %v376_v27 = vpop.permute.xlu1 %375  ;;  %v352_v29 = vsel %vm351_vm13, %v350_v26, %v349_v25 }
  0xc6   : > { %v327_v28 = vpop.permute.xlu0 %326 }
  0xc7   : > { %330 = vst.msk [vmem:[#allocation2] sm:$0xf] %vm329_vm14, %v327_v28  ;;  %vm606_vm14 = vcmask 1031168  }
  0xc8   : > { %357 = vst.msk [vmem:[#allocation2] sm:$0xff] %vm356_vm15, %v352_v29  ;;  %vm630_vm15 = vcmask 900096  }
  0xc9   : > { %379 = vst.msk [vmem:[#allocation2 + $0x4] sm:$0xf] %vm378_vm0, %v376_v27  ;;  %vm654_vm0 = vcmask 891904  }
  0xca   : > { %v420_v30 = vpop.permute.xlu1 %419 }
  0xcb   : > { %v398_v31 = vpop.permute.xlu0 %397 }
  0xcc   : > { %401 = vst.msk [vmem:[#allocation2 + $0x4] sm:$0xf] %vm400_vm1, %v398_v31  ;;  %vm678_vm1 = vcmask 883712  }
  0xcd   : > { %423 = vst.msk [vmem:[#allocation2 + $0x4] sm:$0xf] %vm422_vm2, %v420_v30  ;;  %vm702_vm2 = vcmask 752640  }
  0xce   : > { %v508_v32 = vpop.permute.xlu1 %507 }
  0xcf   : > { %v442_v33 = vpop.permute.xlu0 %441  ;;  %v509_v34 = vrot.slane %v508_v32, 4 }
  0xd0   : > { %445 = vst.msk [vmem:[#allocation2 + $0x4] sm:$0xf] %vm444_vm3, %v442_v33  ;;  %vm726_vm3 = vcmask 744448  }
  0xd1   : > { %v511_v37 = vsel %vm510_vm7, %v509_v34, %v508_v32  ;;  %vm1836_vm7 = vcmask 1041408  }
  0xd3   : > { %v464_v35 = vpop.permute.xlu0 %463 }
  0xd4   : > { %467 = vst.msk [vmem:[#allocation2 + $0x4] sm:$0xf] %vm466_vm6, %v464_v35  ;;  %v486_v36 = vpop.permute.xlu1 %485  ;;  %vm1827_vm6 = vcmask 1040384  }
  0xd5   : > { %489 = vst.msk [vmem:[#allocation2 + $0x4] sm:$0xf] %vm488_vm8, %v486_v36  ;;  %vm1845_vm8 = vcmask 1042432  }
  0xd6   : > { %516 = vst.msk [vmem:[#allocation2 + $0x4] sm:$0xff] %vm515_vm9, %v511_v37  ;;  %vm1862_vm9 = vcmask 1044480  }
  0xd7   : > { %v535_v38 = vpop.permute.xlu0 %534 }
  0xd8   : > { %538 = vst.msk [vmem:[#allocation2 + $0x8] sm:$0xf] %vm537_vm10, %v535_v38  ;;  %v557_v39 = vpop.permute.xlu1 %556  ;;  %vm1871_vm10 = vcmask 1045504  }
  0xd9   : > { %560 = vst.msk [vmem:[#allocation2 + $0x8] sm:$0xf] %vm559_vm11, %v557_v39  ;;  %vm1465_vm11 = vcmask 15360  }
  0xdd   : > { %v592_v40 = vld [vmem:[#allocation2] sm:$0xff] }
  0xde   : > { %598 = vrot.lane.b32.xlu1 %v592_v40, %s2315_s11  ;;  %v596_v41 = vcombine.high %v592_v40, %v592_v40  ;;  %577 = vrot.lane.b32.xlu0 %v592_v40, %s2304_s17  ;;  %566 = vst [vmem:[#allocation3] sm:$0xf] %v592_v40  ;;  %v573_v43 = vcombine.low %v592_v40, %v592_v40 }
  0xe0   : > { %567 = vst [vmem:[#allocation3 + $0x8] sm:$0xf] %v596_v41  ;;  %v562_v42 = vld [vmem:[#allocation2 + $0x8] sm:$0xf] }
  0xe1   : > { %568 = vst [vmem:[#allocation3 + $0x10] sm:$0xf] %v562_v42  ;;  %v641_v44 = vld [vmem:[#allocation2 + $0x8] sm:$0xff] }
  0xe2   : > { %672 = vrot.lane.b32.xlu1 %v592_v40, %s2316_s23  ;;  %624 = vrot.lane.b32.xlu0 %v592_v40, %s2317_s4  ;;  %v574_v45 = vcombine.low %v641_v44, %v641_v44  ;;  %v645_v47 = vcombine.high %v641_v44, %v641_v44 }
  0xe6   : > { %720 = vrot.lane.b32.xlu1 %v592_v40, %s2303_s8  ;;  %600 = vrot.lane.b32.xlu0 %v596_v41, %s2315_s11 }
  0xea   : > { %646 = vrot.lane.b32.xlu1 %v592_v40, %s2306_s20  ;;  %575 = vrot.lane.b32.xlu0 %v573_v43, %s2304_s17 }
  0xee   : > { %694 = vrot.lane.b32.xlu1 %v592_v40, %s2318_s6  ;;  %622 = vrot.lane.b32.xlu0 %v573_v43, %s2317_s4 }
  0xf2   : > { %650 = vrot.lane.b32.xlu0 %v641_v44, %s2306_s20  ;;  %602 = vrot.lane.b32.xlu1 %v641_v44, %s2315_s11 }
  0xf6   : > { %698 = vrot.lane.b32.xlu0 %v641_v44, %s2318_s6  ;;  %648 = vrot.lane.b32.xlu1 %v596_v41, %s2306_s20 }
  0xfa   : > { %670 = vrot.lane.b32.xlu0 %v573_v43, %s2316_s23  ;;  %696 = vrot.lane.b32.xlu1 %v596_v41, %s2318_s6 }
  0xfe   : > { %718 = vrot.lane.b32.xlu0 %v573_v43, %s2303_s8  ;;  %581 = vrot.lane.b32.xlu1 %v641_v44, %s2304_s17 }
 0x102   : > { %744 = vrot.lane.b32.xlu0 %v596_v41, %s2319_s7  ;;  %628 = vrot.lane.b32.xlu1 %v641_v44, %s2317_s4 }
 0x106   : > { %674 = vrot.lane.b32.xlu0 %v574_v45, %s2316_s23  ;;  %579 = vrot.lane.b32.xlu1 %v574_v45, %s2304_s17  ;;  %s2335_s17 = smov 22  }
 0x10a   : > { %722 = vrot.lane.b32.xlu0 %v574_v45, %s2303_s8  ;;  %626 = vrot.lane.b32.xlu1 %v574_v45, %s2317_s4 }
 0x10e   : > { %604 = vrot.lane.b32.xlu0 %v645_v47, %s2315_s11  ;;  %676 = vrot.lane.b32.xlu1 %v641_v44, %s2316_s23  ;;  %s2332_s11 = smov 76   ;;  %s2333_s23 = smov 58  }
 0x112   : > { %652 = vrot.lane.b32.xlu0 %v645_v47, %s2306_s20  ;;  %724 = vrot.lane.b32.xlu1 %v641_v44, %s2303_s8  ;;  %s2069_s8 = sshll.u32 %s2381_s16, 11  ;;  %s1963_s16 = scalar_lea.sflag [#allocation6], %s2464_s5 }
 0x116   : > { %700 = vrot.lane.b32.xlu0 %v645_v47, %s2318_s6  ;;  %746 = vrot.lane.b32.xlu1 %v641_v44, %s2319_s7 }
 0x11a   : > { %742 = vrot.lane.b32.xlu0 %v592_v40, %s2319_s7  ;;  %748 = vrot.lane.b32.xlu1 %v645_v47, %s2319_s7  ;;  %s2334_s7 = smov 40  }
 0x11e   : > { %777 = vperm.xlu0 %2192, %v190_v49  }
 0x150   : > { %v599_v50 = vpop.permute.xlu1 %598  ;;  %v578_v51 = vpop.permute.xlu0 %577 }
 0x154   : > { %v673_v52 = vpop.permute.xlu1 %672  ;;  %v625_v53 = vpop.permute.xlu0 %624 }
 0x158   : > { %v721_v54 = vpop.permute.xlu1 %720  ;;  %v601_v55 = vpop.permute.xlu0 %600 }
 0x159   : > { %v607_v56 = vsel %vm606_vm14, %v599_v50, %v601_v55 }
 0x15a   : > { %613 = vst [vmem:[#allocation3 + $0x18] sm:$0xf] %v607_v56 }
 0x15c   : > { %v647_v57 = vpop.permute.xlu1 %646  ;;  %v576_v58 = vpop.permute.xlu0 %575 }
 0x15d   : > { %v583_v59 = vsel %vm351_vm13, %v576_v58, %v578_v51 }
 0x15e   : > { %589 = vst [vmem:[#allocation3] sm:$0xf0] %v583_v59 }
 0x160   : > { %v695_v60 = vpop.permute.xlu1 %694  ;;  %v623_v61 = vpop.permute.xlu0 %622 }
 0x161   : > { %v631_v62 = vsel %vm630_vm15, %v623_v61, %v625_v53 }
 0x162   : > { %637 = vst [vmem:[#allocation3 + $0x18] sm:$0xf0] %v631_v62 }
 0x164   : > { %v651_v63 = vpop.permute.xlu0 %650  ;;  %v603_v1 = vpop.permute.xlu1 %602 }
 0x165   : > { %v608_v2 = vsel %vm606_vm14, %v601_v55, %v603_v1  ;;  %v760_v40 = vld [vmem:[#allocation3] sm:$0xff] }
 0x166   : > { %614 = vst [vmem:[#allocation3 + $0x20] sm:$0xf] %v608_v2  ;;  %v2323_v2 = vmov 1966171168  }
 0x168   : > { %v2678_v3 = vpop.permute.xlu0 %698  ;;  %v649_v4 = vpop.permute.xlu1 %648 }
 0x169   : > { %v655_v5 = vsel %vm654_vm0, %v647_v57, %v649_v4  ;;  %v656_v6 = vsel %vm654_vm0, %v649_v4, %v651_v63  ;;  %v763_v33 = vld [vmem:[#allocation3 + $0x18] sm:$0xff]  ;;  %v940_v4 = vlaneseq }
 0x16a   : > { %661 = vst [vmem:[#allocation3 + $0x30] sm:$0xf] %v655_v5  ;;  %662 = vst [vmem:[#allocation3 + $0x38] sm:$0xf] %v656_v6  ;;  %v2091_v41 = vpack.c.bf16 %v763_v33, %v760_v40 }
 0x16b   : > { %v941_v6 = vshrl.u32 %v940_v4, 7 }
 0x16c   : > { %v671_v7 = vpop.permute.xlu0 %670  ;;  %v697_v8 = vpop.permute.xlu1 %696 }
 0x16d   : > { %v679_v9 = vsel %vm678_vm1, %v671_v7, %v673_v52  ;;  %v703_v10 = vsel %vm702_vm2, %v695_v60, %v697_v8  ;;  %v704_v11 = vsel %vm702_vm2, %v697_v8, %v2678_v3 }
 0x16e   : > { %685 = vst [vmem:[#allocation3 + $0x30] sm:$0xf0] %v679_v9  ;;  %709 = vst [vmem:[#allocation3 + $0x48] sm:$0xf] %v703_v10 }
 0x16f   : > { %710 = vst [vmem:[#allocation3 + $0x50] sm:$0xf] %v704_v11 }
 0x170   : > { %v719_v12 = vpop.permute.xlu0 %718  ;;  %v582_v13 = vpop.permute.xlu1 %581 }
 0x171   : > { %v727_v14 = vsel %vm726_vm3, %v719_v12, %v721_v54 }
 0x172   : > { %733 = vst [vmem:[#allocation3 + $0x48] sm:$0xf0] %v727_v14 }
 0x174   : > { %v745_v15 = vpop.permute.xlu0 %744  ;;  %v629_v16 = vpop.permute.xlu1 %628 }
 0x178   : > { %v675_v17 = vpop.permute.xlu0 %674  ;;  %v580_v18 = vpop.permute.xlu1 %579 }
 0x179   : > { %v680_v19 = vsel %vm678_vm1, %v673_v52, %v675_v17  ;;  %v584_v20 = vsel %vm351_vm13, %v578_v51, %v580_v18  ;;  %v585_v21 = vsel %vm351_vm13, %v580_v18, %v582_v13  ;;  %vm750_vm13 = vcmask 736256   ;;  %v769_v47 = vld [vmem:[#allocation3 + $0x48] sm:$0xff] }
 0x17a   : > { %686 = vst [vmem:[#allocation3 + $0x38] sm:$0xf0] %v680_v19  ;;  %590 = vst [vmem:[#allocation3 + $0x8] sm:$0xf0] %v584_v20 }
 0x17b   : > { %591 = vst [vmem:[#allocation3 + $0x10] sm:$0xf0] %v585_v21 }
 0x17c   : > { %v723_v22 = vpop.permute.xlu0 %722  ;;  %v627_v23 = vpop.permute.xlu1 %626 }
 0x17d   : > { %v728_v24 = vsel %vm726_vm3, %v721_v54, %v723_v22  ;;  %v632_v25 = vsel %vm630_vm15, %v625_v53, %v627_v23  ;;  %v633_v26 = vsel %vm630_vm15, %v627_v23, %v629_v16  ;;  %v766_v53 = vld [vmem:[#allocation3 + $0x30] sm:$0xff]  ;;  %vm1754_vm15 = vcmask 31744  }
 0x17e   : > { %734 = vst [vmem:[#allocation3 + $0x50] sm:$0xf0] %v728_v24  ;;  %638 = vst [vmem:[#allocation3 + $0x20] sm:$0xf0] %v632_v25  ;;  %v2095_v54 = vpack.c.bf16 %v769_v47, %v766_v53 }
 0x17f   : > { %639 = vst [vmem:[#allocation3 + $0x28] sm:$0xf0] %v633_v26 }
 0x180   : > { %v605_v27 = vpop.permute.xlu0 %604  ;;  %v677_v28 = vpop.permute.xlu1 %676 }
 0x181   : > { %v609_v29 = vsel %vm606_vm14, %v603_v1, %v605_v27  ;;  %v681_v30 = vsel %vm678_vm1, %v675_v17, %v677_v28  ;;  %v761_v36 = vld [vmem:[#allocation3 + $0x8] sm:$0xff]  ;;  %v767_v42 = vld [vmem:[#allocation3 + $0x38] sm:$0xff]  ;;  %v2713_v17 = vsub.s32 0, %v941_v6  ;;  %vm1945_vm14 = vcmask 130048  }
 0x182   : > { %615 = vst [vmem:[#allocation3 + $0x28] sm:$0xf] %v609_v29  ;;  %687 = vst [vmem:[#allocation3 + $0x40] sm:$0xf0] %v681_v30  ;;  %v762_v50 = vld [vmem:[#allocation3 + $0x10] sm:$0xff] }
 0x184   : > { %v653_v31 = vpop.permute.xlu0 %652  ;;  %v725_v32 = vpop.permute.xlu1 %724 }
 0x185   : > { %v657_v34 = vsel %vm654_vm0, %v651_v63, %v653_v31  ;;  %v729_v35 = vsel %vm726_vm3, %v723_v22, %v725_v32  ;;  %v764_v37 = vld [vmem:[#allocation3 + $0x20] sm:$0xff]  ;;  %v770_v38 = vld [vmem:[#allocation3 + $0x50] sm:$0xff] }
 0x186   : > { %663 = vst [vmem:[#allocation3 + $0x40] sm:$0xf] %v657_v34  ;;  %735 = vst [vmem:[#allocation3 + $0x58] sm:$0xf0] %v729_v35  ;;  %v2089_v39 = vpack.c.bf16 %v764_v37, %v761_v36  ;;  %v2093_v45 = vpack.c.bf16 %v770_v38, %v767_v42  ;;  %v189_v63 = vld [vmem:[%s3613_s1] sm:$0xff] }
 0x188   : > { %v701_v43 = vpop.permute.xlu0 %700  ;;  %2090 = vmatprep.subr.bf16.mxu0 %v2089_v39  ;;  %v747_v44 = vpop.permute.xlu1 %746 }
 0x189   : > { %v705_v48 = vsel %vm702_vm2, %v2678_v3, %v701_v43  ;;  %v752_v49 = vsel %vm750_vm13, %v745_v15, %v747_v44  ;;  %2092 = vmatpush1.bf16.msra.mxu0 %v2091_v41  ;;  %v765_v51 = vld [vmem:[#allocation3 + $0x28] sm:$0xff]  ;;  %v938_v3 = vunpack.c.l.s4 %v2323_v2 }
 0x18a   : > { %711 = vst [vmem:[#allocation3 + $0x58] sm:$0xf] %v705_v48  ;;  %758 = vst [vmem:[#allocation3 + $0x68] sm:$0xf] %v752_v49  ;;  %2094 = vmatprep.subr.bf16.mxu0 %v2093_v45  ;;  %v2098_v52 = vpack.c.bf16 %v765_v51, %v762_v50 }
 0x18b   : > { %v939_v5 = vunpack.c.0.s8 %v938_v3 }
 0x18c   : > { %v743_v55 = vpop.permute.xlu0 %742  ;;  %v749_v56 = vpop.permute.xlu1 %748  ;;  %2099 = vmatpush3.bf16.msra.mxu1 %v2098_v52 }
 0x18d   : > { %v751_v57 = vsel %vm750_vm13, %v743_v55, %v745_v15  ;;  %v753_v58 = vsel %vm750_vm13, %v747_v44, %v749_v56  ;;  %2096 = vmatpush1.bf16.msra.mxu0 %v2095_v54  ;;  %2100 = vmatprep.subr.bf16.mxu1 %v2320_v46  ;;  %v768_v60 = vld [vmem:[#allocation3 + $0x40] sm:$0xff]  ;;  %v2710_v8 = vsub.s32 %v939_v5, %v941_v6 }
 0x18e   : > { %757 = vst [vmem:[#allocation3 + $0x60] sm:$0xf] %v751_v57  ;;  %759 = vst [vmem:[#allocation3 + $0x70] sm:$0xf] %v753_v58 }
 0x191   : > { %v773_v59 = vld [vmem:[#allocation3 + $0x68] sm:$0xf]  ;;  %v771_v61 = vld [vmem:[#allocation3 + $0x58] sm:$0xff] }
 0x192   : > { %2058 = vmatprep.subr.msk.mxu0 %vm784_vm4, %v773_v59  ;;  %v2101_v62 = vpack.c.bf16 %v771_v61, %v768_v60 }
 0x194   : > { %2102 = vmatpush3.bf16.msra.mxu1 %v2101_v62 }
 0x195   : > { %v772_v1 = vld [vmem:[#allocation3 + $0x60] sm:$0xf]  ;;  %2084 = vmatprep.subr.mxu1 %v2298_v0  ;;  %v774_v46 = vld [vmem:[#allocation3 + $0x70] sm:$0xf] }
 0x196   : > { %2059 = vmatpush1.msk.msra.mxu0 %vm784_vm4, %v772_v1 }
 0x197   : > { %2060 = vmatmul.mubr.msk.f32.vlgmr.msra.gmra.mrb[0].mxu0 %vm780_vm5, %v189_v63 }
 0x198   : > { %2085 = vmatpush3.msk.msra.mxu1 %vm784_vm4, %v774_v46 }
 0x199   : > { %2087 = vmatmul.mubr.msk.f32.vlgmr.msra.gmra.mrb[0].mxu1 %vm780_vm5, %v189_v63  ;;  %v2791_v63 = vsub.s32 1, %v941_v6 }
 0x19d   : > { %v778_v7 = vpop.permute.xlu0 %777 }
 0x26a   : > { %v860_v9 = vpop.f32.mrb[0].mxu0 }
 0x26b   : > { %v861_v10 = vadd.f32 %v860_v9, %v778_v7  ;;  %v862_v11 = vpop.f32.mrb[1].mxu0 }
 0x26c   : > { %v863_v12 = vadd.f32 %v862_v11, %v778_v7  ;;  %v931_v0 = vpop.f32.mrb[0].mxu1 }
 0x26d   : > { %v936_v13 = vcombine.high %v861_v10, %v861_v10  ;;  %v943_v14 = vrot.slane %v861_v10, %v2710_v8  ;;  %v932_v15 = vadd.f32 %v931_v0, %v778_v7  ;;  %v2088_v16 = vpop.f32.mrb[1].mxu1 }
 0x26e   : > { %v1044_v18 = vcombine.high %v863_v12, %v863_v12  ;;  %v994_v19 = vcombine.low %v861_v10, %v863_v12  ;;  %v995_v20 = vcombine.high %v861_v10, %v863_v12  ;;  %v1051_v33 = vrot.slane %v863_v12, %v2710_v8 }
 0x26f   : > { %v950_v21 = vrot.slane %v936_v13, %v2710_v8  ;;  %v2717_v22 = vrot.slane %v943_v14, %v2710_v8  ;;  %v1094_v23 = vcombine.low %v863_v12, %v932_v15  ;;  %v1095_v25 = vcombine.high %v863_v12, %v932_v15 }
 0x270   : > { %v2720_v24 = vrot.slane %v1044_v18, %v2710_v8  ;;  %v1151_v29 = vrot.slane %v932_v15, %v2710_v8  ;;  %v951_v30 = vcombine.high %v943_v14, %v943_v14  ;;  %v1144_v32 = vcombine.high %v932_v15, %v932_v15 }
 0x271   : > { %v952_v26 = vcombine.high %v950_v21, %v950_v21  ;;  %v2723_v27 = vrot.slane %v950_v21, %v2710_v8  ;;  %v2727_v28 = vrot.slane %v2717_v22, %v2713_v17  ;;  %v1002_v36 = vrot.slane %v994_v19, %v2710_v8 }
 0x272   : > { %v2737_v34 = vrot.slane %v1151_v29, %v2710_v8  ;;  %v1159_v35 = vcombine.high %v1151_v29, %v1151_v29  ;;  %v1009_v39 = vrot.slane %v995_v20, %v2710_v8  ;;  %v2745_v40 = vrot.slane %v951_v30, %v2710_v8 }
 0x273   : > { %v2731_v31 = vrot.slane %v952_v26, %v2710_v8  ;;  %1225 = vrot.lane.b32.xlu1 %v2727_v28, %s2317_s4  ;;  %v1158_v41 = vrot.slane %v1144_v32, %v2710_v8  ;;  %v1102_v42 = vrot.slane %v1094_v23, %v2710_v8  ;;  %v1059_v43 = vcombine.high %v1051_v33, %v1051_v33 }
 0x274   : > { %v1774_v37 = vrot.slane %v2737_v34, %v2713_v17  ;;  %v1181_v38 = vrot.slane %v1159_v35, %v2710_v8  ;;  %v2752_v45 = vrot.slane %v1051_v33, %v2710_v8  ;;  %v2755_v47 = vrot.slane %v1002_v36, %v2710_v8 }
 0x275   : > { %v2758_v48 = vrot.slane %v1009_v39, %v2710_v8  ;;  %v2761_v49 = vrot.slane %v1102_v42, %v2710_v8  ;;  %v1109_v50 = vrot.slane %v1095_v25, %v2710_v8  ;;  %v1160_v52 = vcombine.high %v1158_v41, %v1158_v41 }
 0x276   : > { %1803 = vrot.lane.b32.xlu0 %v1774_v37, %s2324_s22  ;;  %v1778_v44 = vrot.slane %v1181_v38, %v2713_v17  ;;  %v1191_v51 = vcombine.high %v1181_v38, %v1181_v38  ;;  %v2767_v53 = vrot.slane %v2745_v40, %v2713_v17  ;;  %v1010_v54 = vcombine.high %v1002_v36, %v1002_v36 }
 0x277   : > { %v1011_v55 = vcombine.high %v1009_v39, %v1009_v39  ;;  %v2772_v56 = vrot.slane %v1109_v50, %v2710_v8  ;;  %v2778_v58 = vrot.slane %v1160_v52, %v2710_v8  ;;  %v2781_v59 = vrot.slane %v1059_v43, %v2710_v8 }
 0x278   : > { %1805 = vrot.lane.b32.xlu1 %v1778_v44, %s2324_s22  ;;  %v2775_v57 = vrot.slane %v1191_v51, %v2713_v17  ;;  %v1372_v60 = vrot.slane %v2755_v47, %v2713_v17  ;;  %v1404_v61 = vrot.slane %v2758_v48, %v2713_v17  ;;  %v1089_v62 = vcombine.high %v2752_v45, %v2752_v45 }
 0x279   : > { %v1794_v1 = vrot.slane %v2778_v58, %v2713_v17  ;;  %v1074_v46 = vrot.slane %v2720_v24, %v2710_v8  ;;  %v2798_v2 = vrot.slane %v1158_v41, %v2710_v8  ;;  %v1110_v3 = vcombine.high %v1102_v42, %v1102_v42 }
 0x27a   : > { %1249 = vrot.lane.b32.xlu0 %v2727_v28, %s2318_s6  ;;  %v2801_v4 = vrot.slane %v1089_v62, %v2713_v17  ;;  %v2804_v5 = vrot.slane %v1010_v54, %v2710_v8  ;;  %v1111_v6 = vcombine.high %v1109_v50, %v1109_v50  ;;  %v2813_v9 = vcombine.high %v2755_v47, %v2755_v47 }
 0x27b   : > { %v2809_v7 = vrot.slane %v1074_v46, %v2713_v17  ;;  %v2816_v10 = vrot.slane %v1011_v55, %v2710_v8  ;;  %v2822_v12 = vcombine.high %v2758_v48, %v2758_v48  ;;  %v1091_v0 = vcombine.high %v2781_v59, %v2781_v59 }
 0x27c   : > { %1227 = vrot.lane.b32.xlu1 %v2767_v53, %s2317_s4  ;;  %v1384_v11 = vrot.slane %v2804_v5, %v2791_v63  ;;  %v1060_v13 = vcombine.high %v2720_v24, %v2720_v24  ;;  %v1392_v14 = vrot.slane %v2813_v9, %v2791_v63  ;;  %v1661_v16 = vrot.slane %v2761_v49, %v2713_v17 }
 0x27d   : > { %v1416_v15 = vrot.slane %v2816_v10, %v2791_v63  ;;  %v1693_v18 = vrot.slane %v2772_v56, %v2713_v17  ;;  %v1190_v19 = vcombine.high %v2798_v2, %v2798_v2  ;;  %v1424_v20 = vrot.slane %v2822_v12, %v2791_v63 }
 0x27e   : > { %1273 = vrot.lane.b32.xlu0 %v2727_v28, %s2325_s26  ;;  %v2843_v21 = vrot.slane %v1091_v0, %v2713_v17  ;;  %v1088_v23 = vrot.slane %v1060_v13, %v2710_v8  ;;  %v2849_v24 = vrot.slane %v1110_v3, %v2710_v8  ;;  %v2855_v26 = vcombine.high %v2761_v49, %v2761_v49 }
 0x27f   : > { %v2863_v32 = vrot.slane %v1111_v6, %v2710_v8  ;;  %v2869_v35 = vcombine.high %v2772_v56, %v2772_v56  ;;  %v1192_v36 = vcombine.high %v2778_v58, %v2778_v58  ;;  %v1090_v42 = vcombine.high %v1074_v46, %v1074_v46 }
 0x280   : > { %1251 = vrot.lane.b32.xlu1 %v2767_v53, %s2318_s6  ;;  %v2860_v30 = vrot.slane %v1088_v23, %v2713_v17  ;;  %v2887_v43 = vcombine.high %v2804_v5, %v2804_v5  ;;  %v2895_v50 = vcombine.high %v2816_v10, %v2816_v10  ;;  %v1092_v52 = vcombine.high %v1088_v23, %v1088_v23 }
 0x281   : > { %v2900_v54 = vrot.slane %v1090_v42, %v2713_v17  ;;  %v2921_v23 = vcombine.high %v2849_v24, %v2849_v24  ;;  %v2925_v42 = vcombine.high %v2863_v32, %v2863_v32  ;;  %v2928_v46 = vrot.slane %v1190_v19, %v2713_v17 }
 0x282   : > { %1297 = vrot.lane.b32.xlu0 %v2727_v28, %s2326_s27  ;;  %v2913_v6 = vrot.slane %v1092_v52, %v2713_v17  ;;  %v2931_v52 = vrot.slane %v1192_v36, %v2713_v17  ;;  %v1485_v36 = vrot.slane %v2752_v45, %v2713_v17  ;;  %v1408_v45 = vrot.slane %v2758_v48, %v2791_v63 }
 0x283   : > { %v1790_v19 = vrot.slane %v2798_v2, %v2713_v17  ;;  %v1697_v2 = vrot.slane %v2772_v56, %v2791_v63 }
 0x284   : > { %1275 = vrot.lane.b32.xlu1 %v2767_v53, %s2325_s26 }
 0x286   : > { %1321 = vrot.lane.b32.xlu0 %v2727_v28, %s2327_s28 }
 0x288   : > { %1299 = vrot.lane.b32.xlu1 %v2767_v53, %s2326_s27 }
 0x28a   : > { %1345 = vrot.lane.b32.xlu0 %v2727_v28, %s2328_s29  ;;  %v1376_v28 = vrot.slane %v2755_v47, %v2791_v63 }
 0x28c   : > { %1323 = vrot.lane.b32.xlu1 %v2767_v53, %s2327_s28 }
 0x28e   : > { %1514 = vrot.lane.b32.xlu0 %v1485_v36, %s2329_s30 }
 0x290   : > { %1347 = vrot.lane.b32.xlu1 %v2767_v53, %s2328_s29  ;;  %v1489_v53 = vrot.slane %v2781_v59, %v2713_v17  ;;  %v2972_v59 = vcombine.high %v2717_v22, %v2717_v22 }
 0x292   : > { %1538 = vrot.lane.b32.xlu0 %v1485_v36, %s2330_s9 }
 0x294   : > { %1435 = vrot.lane.b32.xlu1 %v1376_v28, %s2331_s10  ;;  %v1189_v28 = vcombine.high %v2737_v34, %v2737_v34  ;;  %v1204_v34 = vrot.slane %v2972_v59, %v2713_v17 }
 0x296   : > { %1562 = vrot.lane.b32.xlu0 %v1485_v36, %s2332_s11 }
 0x298   : > { %1451 = vrot.lane.b32.xlu1 %v1408_v45, %s2331_s10  ;;  %v1782_v45 = vrot.slane %v1189_v28, %v2713_v17  ;;  %v1665_v28 = vrot.slane %v2761_v49, %v2791_v63 }
 0x29a   : > { %1586 = vrot.lane.b32.xlu0 %v1485_v36, %s2333_s23 }
 0x29c   : > { %1516 = vrot.lane.b32.xlu1 %v1489_v53, %s2329_s30 }
 0x29e   : > { %1610 = vrot.lane.b32.xlu0 %v1485_v36, %s2334_s7 }
 0x2a0   : > { %1540 = vrot.lane.b32.xlu1 %v1489_v53, %s2330_s9 }
 0x2a2   : > { %1634 = vrot.lane.b32.xlu0 %v1485_v36, %s2335_s17  ;;  %v1212_v36 = vrot.slane %v2723_v27, %v2713_v17 }
 0x2a4   : > { %1564 = vrot.lane.b32.xlu1 %v1489_v53, %s2332_s11 }
 0x2a6   : > { %1807 = vrot.lane.b32.xlu0 %v1782_v45, %s2324_s22 }
 0x2a8   : > { %1588 = vrot.lane.b32.xlu1 %v1489_v53, %s2333_s23 }
 0x2aa   : > { %1811 = vrot.lane.b32.xlu0 %v1790_v19, %s2324_s22  ;;  %v2998_v19 = vcombine.high %v2745_v40, %v2745_v40 }
 0x2ac   : > { %1612 = vrot.lane.b32.xlu1 %v1489_v53, %s2334_s7 }
 0x2ae   : > { %1229 = vrot.lane.b32.xlu0 %v1204_v34, %s2317_s4 }
 0x2b0   : > { %1636 = vrot.lane.b32.xlu1 %v1489_v53, %s2335_s17  ;;  %v1208_v53 = vrot.slane %v2998_v19, %v2713_v17 }
 0x2b2   : > { %1233 = vrot.lane.b32.xlu0 %v1212_v36, %s2317_s4 }
 0x2b4   : > { %1724 = vrot.lane.b32.xlu1 %v1665_v28, %s2336_s19 }
 0x2b6   : > { %1253 = vrot.lane.b32.xlu0 %v1204_v34, %s2318_s6 }
 0x2b8   : > { %1740 = vrot.lane.b32.xlu1 %v1697_v2, %s2336_s19 }
 0x2ba   : > { %1257 = vrot.lane.b32.xlu0 %v1212_v36, %s2318_s6 }
 0x2bc   : > { %1809 = vrot.lane.b32.xlu1 %v2775_v57, %s2324_s22  ;;  %v1216_v57 = vrot.slane %v2731_v31, %v2713_v17 }
 0x2be   : > { %1277 = vrot.lane.b32.xlu0 %v1204_v34, %s2325_s26 }
 0x2c0   : > { %1813 = vrot.lane.b32.xlu1 %v1794_v1, %s2324_s22 }
 0x2c2   : > { %1281 = vrot.lane.b32.xlu0 %v1212_v36, %s2325_s26 }
 0x2c4   : > { %1231 = vrot.lane.b32.xlu1 %v1208_v53, %s2317_s4 }
 0x2c6   : > { %1301 = vrot.lane.b32.xlu0 %v1204_v34, %s2326_s27 }
 0x2c8   : > { %1235 = vrot.lane.b32.xlu1 %v1216_v57, %s2317_s4 }
 0x2ca   : > { %1305 = vrot.lane.b32.xlu0 %v1212_v36, %s2326_s27 }
 0x2cc   : > { %1255 = vrot.lane.b32.xlu1 %v1208_v53, %s2318_s6 }
 0x2ce   : > { %1325 = vrot.lane.b32.xlu0 %v1204_v34, %s2327_s28 }
 0x2d0   : > { %1259 = vrot.lane.b32.xlu1 %v1216_v57, %s2318_s6 }
 0x2d2   : > { %1329 = vrot.lane.b32.xlu0 %v1212_v36, %s2327_s28 }
 0x2d4   : > { %1279 = vrot.lane.b32.xlu1 %v1208_v53, %s2325_s26 }
 0x2d6   : > { %1349 = vrot.lane.b32.xlu0 %v1204_v34, %s2328_s29 }
 0x2d8   : > { %1283 = vrot.lane.b32.xlu1 %v1216_v57, %s2325_s26 }
 0x2da   : > { %1353 = vrot.lane.b32.xlu0 %v1212_v36, %s2328_s29 }
 0x2dc   : > { %1303 = vrot.lane.b32.xlu1 %v1208_v53, %s2326_s27 }
 0x2de   : > { %1433 = vrot.lane.b32.xlu0 %v1372_v60, %s2331_s10 }
 0x2e0   : > { %1307 = vrot.lane.b32.xlu1 %v1216_v57, %s2326_s27 }
 0x2e2   : > { %1449 = vrot.lane.b32.xlu0 %v1404_v61, %s2331_s10 }
 0x2e4   : > { %1327 = vrot.lane.b32.xlu1 %v1208_v53, %s2327_s28 }
 0x2e5   : > { %v3033_v58 = vpop.permute.xlu1 %1225 }
 0x2e6   : > { %1518 = vrot.lane.b32.xlu0 %v2801_v4, %s2329_s30 }
 0x2e8   : > { %v3037_v1 = vpop.permute.xlu0 %1803  ;;  %1331 = vrot.lane.b32.xlu1 %v1216_v57, %s2327_s28 }
 0x2ea   : > { %v3040_v47 = vpop.permute.xlu1 %1805  ;;  %1522 = vrot.lane.b32.xlu0 %v2809_v7, %s2329_s30 }
 0x2eb   : > { %3622 = vst [vmem:[#allocation10_spill] sm:$0xff] %v3040_v47 }
 0x2ec   : > { %v3044_v60 = vpop.permute.xlu0 %1249  ;;  %1351 = vrot.lane.b32.xlu1 %v1208_v53, %s2328_s29 }
 0x2ee   : > { %v3047_v48 = vpop.permute.xlu1 %1227  ;;  %1542 = vrot.lane.b32.xlu0 %v2801_v4, %s2330_s9 }
 0x2f0   : > { %v3051_v61 = vpop.permute.xlu0 %1273  ;;  %1355 = vrot.lane.b32.xlu1 %v1216_v57, %s2328_s29 }
 0x2f2   : > { %v3054_v45 = vpop.permute.xlu1 %1251  ;;  %1546 = vrot.lane.b32.xlu0 %v2809_v7, %s2330_s9 }
 0x2f4   : > { %v3058_v34 = vpop.permute.xlu0 %1297  ;;  %1439 = vrot.lane.b32.xlu1 %v1384_v11, %s2331_s10 }
 0x2f6   : > { %v3064_v36 = vpop.permute.xlu1 %1275  ;;  %1566 = vrot.lane.b32.xlu0 %v2801_v4, %s2332_s11 }
 0x2f8   : > { %v3068_v28 = vpop.permute.xlu0 %1321  ;;  %1443 = vrot.lane.b32.xlu1 %v1392_v14, %s2331_s10 }
 0x2fa   : > { %v3074_v2 = vpop.permute.xlu1 %1299  ;;  %1570 = vrot.lane.b32.xlu0 %v2809_v7, %s2332_s11 }
 0x2fc   : > { %v3078_v53 = vpop.permute.xlu0 %1345  ;;  %1455 = vrot.lane.b32.xlu1 %v1416_v15, %s2331_s10 }
 0x2fe   : > { %v3084_v11 = vpop.permute.xlu1 %1323  ;;  %1590 = vrot.lane.b32.xlu0 %v2801_v4, %s2333_s23 }
 0x300   : > { %v3088_v57 = vpop.permute.xlu0 %1514  ;;  %1459 = vrot.lane.b32.xlu1 %v1424_v20, %s2331_s10 }
 0x302   : > { %v3094_v14 = vpop.permute.xlu1 %1347  ;;  %1594 = vrot.lane.b32.xlu0 %v2809_v7, %s2333_s23 }
 0x304   : > { %v3098_v62 = vpop.permute.xlu0 %1538  ;;  %1520 = vrot.lane.b32.xlu1 %v2843_v21, %s2329_s30 }
 0x306   : > { %v3102_v15 = vpop.permute.xlu1 %1435  ;;  %1614 = vrot.lane.b32.xlu0 %v2801_v4, %s2334_s7 }
 0x308   : > { %v3106_v0 = vpop.permute.xlu0 %1562  ;;  %1524 = vrot.lane.b32.xlu1 %v2860_v30, %s2329_s30 }
 0x30a   : > { %v3110_v20 = vpop.permute.xlu1 %1451  ;;  %1618 = vrot.lane.b32.xlu0 %v2809_v7, %s2334_s7 }
 0x30c   : > { %v3114_v13 = vpop.permute.xlu0 %1586  ;;  %1544 = vrot.lane.b32.xlu1 %v2843_v21, %s2330_s9 }
 0x30e   : > { %v3118_v51 = vpop.permute.xlu1 %1516  ;;  %1638 = vrot.lane.b32.xlu0 %v2801_v4, %s2335_s17  ;;  %v3142_v4 = vcombine.high %v2723_v27, %v2723_v27 }
 0x30f   : > { %3623 = vst [vmem:[#allocation11_spill] sm:$0xff] %v3118_v51 }
 0x310   : > { %v3122_v3 = vpop.permute.xlu0 %1610  ;;  %1548 = vrot.lane.b32.xlu1 %v2860_v30, %s2330_s9  ;;  %v1220_v49 = vrot.slane %v3142_v4, %v2713_v17 }
 0x312   : > { %v3126_v44 = vpop.permute.xlu1 %1540  ;;  %1642 = vrot.lane.b32.xlu0 %v2809_v7, %s2335_s17 }
 0x314   : > { %v3130_v55 = vpop.permute.xlu0 %1634  ;;  %1568 = vrot.lane.b32.xlu1 %v2843_v21, %s2332_s11 }
 0x316   : > { %v3134_v38 = vpop.permute.xlu1 %1564  ;;  %1722 = vrot.lane.b32.xlu0 %v1661_v16, %s2336_s19 }
 0x317   : > { %3624 = vst [vmem:[#allocation12_spill] sm:$0xff] %v3134_v38 }
 0x318   : > { %v3144_v41 = vpop.permute.xlu0 %1807  ;;  %1572 = vrot.lane.b32.xlu1 %v2860_v30, %s2332_s11 }
 0x319   : > { %3625 = vst [vmem:[#allocation13_spill] sm:$0xff] %v3144_v41 }
 0x31a   : > { %v3148_v7 = vpop.permute.xlu1 %1588  ;;  %1738 = vrot.lane.b32.xlu0 %v1693_v18, %s2336_s19 }
 0x31b   : > { %3626 = vst [vmem:[#allocation14_spill] sm:$0xff] %v3148_v7  ;;  %v3631_v7 = vrot.slane %v2849_v24, %v2791_v63 }
 0x31c   : > { %v3154_v33 = vpop.permute.xlu0 %1811  ;;  %1592 = vrot.lane.b32.xlu1 %v2843_v21, %s2333_s23 }
 0x31e   : > { %v3160_v16 = vpop.permute.xlu1 %1612  ;;  %1237 = vrot.lane.b32.xlu0 %v1220_v49, %s2317_s4 }
 0x31f   : > { %3627 = vst [vmem:[#allocation15_spill] sm:$0xff] %v3160_v16 }
 0x320   : > { %v1230_v39 = vpop.permute.xlu0 %1229  ;;  %1596 = vrot.lane.b32.xlu1 %v2860_v30, %s2333_s23 }
 0x322   : > { %v3165_v29 = vpop.permute.xlu1 %1636  ;;  %1261 = vrot.lane.b32.xlu0 %v1220_v49, %s2318_s6 }
 0x323   : > { %3628 = vst [vmem:[#allocation16_spill] sm:$0xff] %v3165_v29 }
 0x324   : > { %v3168_v56 = vpop.permute.xlu0 %1233  ;;  %1616 = vrot.lane.b32.xlu1 %v2843_v21, %s2334_s7 }
 0x326   : > { %v3172_v18 = vpop.permute.xlu1 %1724  ;;  %1285 = vrot.lane.b32.xlu0 %v1220_v49, %s2325_s26 }
 0x328   : > { %v1254_v8 = vpop.permute.xlu0 %1253  ;;  %1620 = vrot.lane.b32.xlu1 %v2860_v30, %s2334_s7 }
 0x32a   : > { %v3177_v25 = vpop.permute.xlu1 %1740  ;;  %1309 = vrot.lane.b32.xlu0 %v1220_v49, %s2326_s27 }
 0x32c   : > { %v3180_v37 = vpop.permute.xlu0 %1257  ;;  %1640 = vrot.lane.b32.xlu1 %v2843_v21, %s2335_s17  ;;  %v1830_v21 = vsel %vm1827_vm6, %v2972_v59, %v1230_v39  ;;  %v3634_v39 = vrot.slane %v2813_v9, %v2713_v17 }
 0x32e   : > { %v3184_v41 = vpop.permute.xlu1 %1809  ;;  %1333 = vrot.lane.b32.xlu0 %v1220_v49, %s2327_s28 }
 0x32f   : > { %3629 = vst [vmem:[#allocation17_spill] sm:$0xff] %v3184_v41 }
 0x330   : > { %v1278_v47 = vpop.permute.xlu0 %1277  ;;  %1644 = vrot.lane.b32.xlu1 %v2860_v30, %s2335_s17  ;;  %v3632_v30 = vrot.slane %v2804_v5, %v2713_v17 }
 0x332   : > { %v3189_v29 = vpop.permute.xlu1 %1813  ;;  %1357 = vrot.lane.b32.xlu0 %v1220_v49, %s2328_s29  ;;  %v1839_v49 = vsel %vm1836_vm7, %v1830_v21, %v1254_v8  ;;  %v3635_v8 = vrot.slane %v2863_v32, %v2791_v63 }
 0x333   : > { %3630 = vst [vmem:[#allocation18_spill] sm:$0xff] %v3189_v29  ;;  %v1848_v29 = vsel %vm1845_vm8, %v1839_v49, %v1278_v47  ;;  %v3221_v47 = vcombine.high %v2731_v31, %v2731_v31  ;;  %v3637_v49 = vrot.slane %v2869_v35, %v2791_v63 }
 0x334   : > { %v3192_v16 = vpop.permute.xlu0 %1281  ;;  %1728 = vrot.lane.b32.xlu1 %v3631_v7, %s2336_s19  ;;  %v3633_v7 = vrot.slane %v2855_v26, %v2791_v63 }
 0x336   : > { %v1232_v41 = vpop.permute.xlu1 %1231  ;;  %1437 = vrot.lane.b32.xlu0 %v3632_v30, %s2331_s10 }
 0x337   : > { %v1831_v21 = vsel %vm1827_vm6, %v2998_v19, %v1232_v41 }
 0x338   : > { %v1302_v38 = vpop.permute.xlu0 %1301  ;;  %1732 = vrot.lane.b32.xlu1 %v3633_v7, %s2336_s19 }
 0x339   : > { %v1856_v51 = vsel %vm784_vm4, %v1848_v29, %v1302_v38  ;;  %v3636_v29 = vrot.slane %v2816_v10, %v2713_v17  ;;  %v3638_v10 = vrot.slane %v2822_v12, %v2713_v17 }
 0x33a   : > { %1441 = vrot.lane.b32.xlu0 %v3634_v39, %s2331_s10  ;;  %v1236_v5 = vpop.permute.xlu1 %1235  ;;  %v1224_v39 = vrot.slane %v3221_v47, %v2713_v17 }
 0x33b   : > { %v1833_v41 = vsel %vm1827_vm6, %v2731_v31, %v1236_v5 }
 0x33c   : > { %v1306_v59 = vpop.permute.xlu0 %1305  ;;  %1744 = vrot.lane.b32.xlu1 %v3635_v8, %s2336_s19 }
 0x33e   : > { %1453 = vrot.lane.b32.xlu0 %v3636_v29, %s2331_s10  ;;  %v1256_v9 = vpop.permute.xlu1 %1255 }
 0x33f   : > { %v1840_v38 = vsel %vm1836_vm7, %v1831_v21, %v1256_v9 }
 0x340   : > { %v1326_v30 = vpop.permute.xlu0 %1325  ;;  %1748 = vrot.lane.b32.xlu1 %v3637_v49, %s2336_s19 }
 0x341   : > { %v1865_v7 = vsel %vm1862_vm9, %v1856_v51, %v1326_v30  ;;  %v1828_v30 = vsel %vm1827_vm6, %v2717_v22, %v3033_v58 }
 0x342   : > { %1457 = vrot.lane.b32.xlu0 %v3638_v10, %s2331_s10  ;;  %v1260_v19 = vpop.permute.xlu1 %1259 }
 0x343   : > { %v1842_v8 = vsel %vm1836_vm7, %v1833_v41, %v1260_v19 }
 0x344   : > { %v1330_v21 = vpop.permute.xlu0 %1329  ;;  %1239 = vrot.lane.b32.xlu1 %v1224_v39, %s2317_s4  ;;  %s2057_s4 = sshll.u32 %s2464_s5, 7 }
 0x346   : > { %1526 = vrot.lane.b32.xlu0 %v2900_v54, %s2329_s30  ;;  %v1280_v51 = vpop.permute.xlu1 %1279 }
 0x347   : > { %v1849_v31 = vsel %vm1845_vm8, %v1840_v38, %v1280_v51  ;;  %v1837_v38 = vsel %vm1836_vm7, %v1828_v30, %v3044_v60  ;;  %v1832_v60 = vsel %vm1827_vm6, %v2723_v27, %v3168_v56 }
 0x348   : > { %v1350_v5 = vpop.permute.xlu0 %1349  ;;  %1263 = vrot.lane.b32.xlu1 %v1224_v39, %s2318_s6  ;;  %s3287_s6 = scalar_lea.vmem [#allocation7], %s2057_s4 }
 0x349   : > { %v3250_v12 = vsel %vm1871_vm10, %v1865_v7, %v1350_v5  ;;  %v1846_v7 = vsel %vm1845_vm8, %v1837_v38, %v3051_v61  ;;  %v3640_v38 = vrot.slane %v2849_v24, %v2713_v17  ;;  %s1976_s20 = sshll.u32 %s3287_s6, 4  ;;  %s3564_s20 = int_to_ptr.vmem [resolvable:$true] %s1976_s20 }
 0x34a   : > { %1550 = vrot.lane.b32.xlu0 %v2900_v54, %s2330_s9  ;;  %v1284_v29 = vpop.permute.xlu1 %1283  ;;  %v1854_v10 = vsel %vm784_vm4, %v1846_v7, %v3058_v34  ;;  %v1841_v34 = vsel %vm1836_vm7, %v1832_v60, %v3180_v37 }
 0x34b   : > { %v1851_v9 = vsel %vm1845_vm8, %v1842_v8, %v1284_v29  ;;  %v1863_v58 = vsel %vm1862_vm9, %v1854_v10, %v3068_v28  ;;  %v1850_v28 = vsel %vm1845_vm8, %v1841_v34, %v3192_v16 }
 0x34c   : > { %v1354_v49 = vpop.permute.xlu0 %1353  ;;  %1287 = vrot.lane.b32.xlu1 %v1224_v39, %s2325_s26  ;;  %v1872_v19 = vsel %vm1871_vm10, %v1863_v58, %v3078_v53  ;;  %v1858_v56 = vsel %vm784_vm4, %v1850_v28, %v1306_v59 }
 0x34d   : > { %v1867_v53 = vsel %vm1862_vm9, %v1858_v56, %v1330_v21 }
 0x34e   : > { %1574 = vrot.lane.b32.xlu0 %v2900_v54, %s2332_s11  ;;  %v1304_v41 = vpop.permute.xlu1 %1303  ;;  %v1876_v16 = vsel %vm1871_vm10, %v1867_v53, %v1354_v49  ;;  %v3639_v49 = vrot.slane %v2887_v43, %v2791_v63 }
 0x34f   : > { %v1857_v22 = vsel %vm784_vm4, %v1849_v31, %v1304_v41 }
 0x350   : > { %v1434_v61 = vpop.permute.xlu0 %1433  ;;  %1311 = vrot.lane.b32.xlu1 %v1224_v39, %s2326_s27  ;;  %s3562_s27 = scalar_lea.hbm %s3615_s3, %s2069_s8 }
 0x351   : > { %v1466_v8 = vsel %vm1465_vm11, %v1434_v61, %v3102_v15  ;;  %v3643_v61 = vrot.slane %v2863_v32, %v2713_v17  ;;  %v3645_v32 = vrot.slane %v2887_v43, %v2713_v17  ;;  %v3647_v43 = vrot.slane %v2921_v23, %v2713_v17 }
 0x352   : > { %v1881_v51 = vsel %vm1880_vm12, %v1872_v19, %v1466_v8  ;;  %1598 = vrot.lane.b32.xlu0 %v2900_v54, %s2333_s23  ;;  %v1308_v27 = vpop.permute.xlu1 %1307  ;;  %v3644_v8 = vrot.slane %v2869_v35, %v2713_v17 }
 0x353   : > { %1946 = vst.msk [vmem:[%s3287_s6] sm:$0xff] %vm1945_vm14, %v1881_v51  ;;  %v1859_v37 = vsel %vm784_vm4, %v1851_v9, %v1308_v27 }
 0x354   : > { %v1450_v15 = vpop.permute.xlu0 %1449  ;;  %1335 = vrot.lane.b32.xlu1 %v1224_v39, %s2327_s28  ;;  %s2227_s28 = scalar_lea.vmem %s3564_s20, 2048 }
 0x355   : > { %v1470_v31 = vsel %vm1465_vm11, %v1450_v15, %v3110_v20  ;;  %p2228_p6 = scmp.ne.s32.totalorder %s3564_s20, %s2227_s28 }
 0x356   : > { %v1885_v59 = vsel %vm1880_vm12, %v1876_v16, %v1470_v31  ;;  %1622 = vrot.lane.b32.xlu0 %v2900_v54, %s2334_s7  ;;  %v1328_v5 = vpop.permute.xlu1 %1327 }
 0x357   : > { %1954 = vst.msk [vmem:[%s3287_s6 + $0x40] sm:$0xff] %vm1945_vm14, %v1885_v59  ;;  %v1866_v29 = vsel %vm1862_vm9, %v1857_v22, %v1328_v5  ;;  %v3642_v22 = vrot.slane %v2855_v26, %v2713_v17  ;;  %p2229_p12 = pnand %p2228_p6, %p3660_p11 }
 0x358   : > { %v1519_v9 = vpop.permute.xlu0 %1518  ;;  %1359 = vrot.lane.b32.xlu1 %v1224_v39, %s2328_s29  ;;  %s2337_s29 = smov [#allocation7]  }
 0x359   : > { %p2230_p13 = pneg %p2229_p12 }
 0x35a   : > { %1646 = vrot.lane.b32.xlu0 %v2900_v54, %s2335_s17  ;;  %v1332_v21 = vpop.permute.xlu1 %1331  ;;  %v3641_v54 = vrot.slane %v2895_v50, %v2791_v63 }
 0x35b   : > { %v1868_v30 = vsel %vm1862_vm9, %v1859_v37, %v1332_v21  ;;  %v3646_v37 = vrot.slane %v2895_v50, %v2713_v17  ;;  %v3648_v50 = vrot.slane %v2925_v42, %v2713_v17 }
 0x35c   : > { %v1523_v20 = vpop.permute.xlu0 %1522  ;;  %1447 = vrot.lane.b32.xlu1 %v3639_v49, %s2331_s10  ;;  %v3650_v49 = vrot.slane %v2925_v42, %v2791_v63 }
 0x35e   : > { %1726 = vrot.lane.b32.xlu0 %v3640_v38, %s2336_s19  ;;  %v1352_v7 = vpop.permute.xlu1 %1351 }
 0x35f   : > { %v3316_v39 = vsel %vm1871_vm10, %v1866_v29, %v1352_v7 }
 0x360   : > { %v1543_v41 = vpop.permute.xlu0 %1542  ;;  %1463 = vrot.lane.b32.xlu1 %v3641_v54, %s2331_s10 }
 0x361   : > { %v1891_v10 = vsel %vm1827_vm6, %v1519_v9, %v1543_v41  ;;  %v3649_v9 = vrot.slane %v2921_v23, %v2791_v63 }
 0x362   : > { %1730 = vrot.lane.b32.xlu0 %v3642_v22, %s2336_s19  ;;  %v1356_v58 = vpop.permute.xlu1 %1355 }
 0x363   : > { %v3328_v24 = vsel %vm1871_vm10, %v1868_v30, %v1356_v58 }
 0x364   : > { %v1547_v60 = vpop.permute.xlu0 %1546  ;;  %1528 = vrot.lane.b32.xlu1 %v2913_v6, %s2329_s30  ;;  %s2231_s30 = sshll.u32 %s2337_s29, 4  ;;  %s2232_s30 = int_to_ptr.vmem [resolvable:$false] %s2231_s30 }
 0x365   : > { %p2234_p8 = scmp.lt.s32.totalorder %s3564_s20, %s2232_s30 }
 0x366   : > { %1742 = vrot.lane.b32.xlu0 %v3643_v61, %s2336_s19  ;;  %v3336_v19 = vpop.permute.xlu1 %1439 }
 0x368   : > { %v1567_v34 = vpop.permute.xlu0 %1566  ;;  %1552 = vrot.lane.b32.xlu1 %v2913_v6, %s2330_s9  ;;  %s2233_s9 = scalar_lea.vmem %s2232_s30, 4096 }
 0x369   : > { %v1899_v26 = vsel %vm1836_vm7, %v1891_v10, %v1567_v34  ;;  %p2235_p10 = scmp.lt.s32.totalorder %s2233_s9, %s2227_s28 }
 0x36a   : > { %1746 = vrot.lane.b32.xlu0 %v3644_v8, %s2336_s19  ;;  %v3345_v28 = vpop.permute.xlu1 %1443 }
 0x36b   : > { %p2236_p0 = por %p2235_p10, %p2234_p8 }
 0x36c   : > { %v1571_v51 = vpop.permute.xlu0 %1570  ;;  %1576 = vrot.lane.b32.xlu1 %v2913_v6, %s2332_s11 }
 0x36d   : > { %p2237_p2 = pnand %p2236_p0, %p2230_p13 }
 0x36e   : > { %1445 = vrot.lane.b32.xlu0 %v3645_v32, %s2331_s10  ;;  %v3353_v27 = vpop.permute.xlu1 %1455 }
 0x370   : > { %v1591_v56 = vpop.permute.xlu0 %1590  ;;  %1600 = vrot.lane.b32.xlu1 %v2913_v6, %s2333_s23 }
 0x371   : > { %v1907_v35 = vsel %vm1845_vm8, %v1899_v26, %v1591_v56 }
 0x372   : > { %1461 = vrot.lane.b32.xlu0 %v3646_v37, %s2331_s10  ;;  %v3362_v53 = vpop.permute.xlu1 %1459 }
 0x374   : > { %v1595_v15 = vpop.permute.xlu0 %1594  ;;  %1624 = vrot.lane.b32.xlu1 %v2913_v6, %s2334_s7 }
 0x376   : > { %1734 = vrot.lane.b32.xlu0 %v3647_v43, %s2336_s19  ;;  %v1521_v16 = vpop.permute.xlu1 %1520 }
 0x378   : > { %v1615_v31 = vpop.permute.xlu0 %1614  ;;  %1648 = vrot.lane.b32.xlu1 %v2913_v6, %s2335_s17 }
 0x379   : > { %v1915_v59 = vsel %vm784_vm4, %v1907_v35, %v1615_v31 }
 0x37a   : > { %1750 = vrot.lane.b32.xlu0 %v3648_v50, %s2336_s19  ;;  %v1525_v5 = vpop.permute.xlu1 %1524 }
 0x37c   : > { %v1619_v29 = vpop.permute.xlu0 %1618  ;;  %1736 = vrot.lane.b32.xlu1 %v3649_v9, %s2336_s19 }
 0x37e   : > { %1815 = vrot.lane.b32.xlu0 %v2928_v46, %s2324_s22  ;;  %v1545_v21 = vpop.permute.xlu1 %1544  ;;  %v1889_v46 = vsel %vm1827_vm6, %v3088_v57, %v3098_v62  ;;  %v1893_v62 = vsel %vm1827_vm6, %v1523_v20, %v1547_v60 }
 0x37f   : > { %v1892_v6 = vsel %vm1827_vm6, %v1521_v16, %v1545_v21  ;;  %v1897_v41 = vsel %vm1836_vm7, %v1889_v46, %v3106_v0  ;;  %v1901_v57 = vsel %vm1836_vm7, %v1893_v62, %v1571_v51 }
 0x380   : > { %v1639_v30 = vpop.permute.xlu0 %1638  ;;  %1752 = vrot.lane.b32.xlu1 %v3650_v49, %s2336_s19  ;;  %v1905_v63 = vsel %vm1845_vm8, %v1897_v41, %v3114_v13  ;;  %v1909_v61 = vsel %vm1845_vm8, %v1901_v57, %v1595_v15 }
 0x381   : > { %v3389_v17 = vsel %vm1862_vm9, %v1915_v59, %v1639_v30  ;;  %v1913_v10 = vsel %vm784_vm4, %v1905_v63, %v3122_v3 }
 0x382   : > { %v1549_v38 = vpop.permute.xlu1 %1548 }
 0x383   : > { %v1894_v7 = vsel %vm1827_vm6, %v1525_v5, %v1549_v38 }
 0x384   : > { %v1643_v23 = vpop.permute.xlu0 %1642  ;;  %1817 = vrot.lane.b32.xlu1 %v2931_v52, %s2324_s22  ;;  %v1921_v52 = vsel %vm1862_vm9, %v1913_v10, %v3130_v55  ;;  %v1917_v55 = vsel %vm784_vm4, %v1909_v61, %v1619_v29  ;;  %v1829_v29 = vsel %vm1827_vm6, %v2745_v40, %v3047_v48 }
 0x385   : > { %v1838_v21 = vsel %vm1836_vm7, %v1829_v29, %v3054_v45 }
 0x386   : > { %v1569_v54 = vpop.permute.xlu1 %1568 }
 0x387   : > { %v1900_v42 = vsel %vm1836_vm7, %v1892_v6, %v1569_v54  ;;  %v1847_v6 = vsel %vm1845_vm8, %v1838_v21, %v3064_v36 }
 0x388   : > { %v1723_v22 = vpop.permute.xlu0 %1722  ;;  %v1855_v49 = vsel %vm784_vm4, %v1847_v6, %v3074_v2 }
 0x389   : > { %v1755_v0 = vsel %vm1754_vm15, %v1723_v22, %v3172_v18  ;;  %v1925_v18 = vsel %vm1862_vm9, %v1917_v55, %v1643_v23  ;;  %v1864_v38 = vsel %vm1862_vm9, %v1855_v49, %v3084_v11 }
 0x38a   : > { %v1929_v58 = vsel %vm1871_vm10, %v1921_v52, %v1755_v0  ;;  %v1573_v13 = vpop.permute.xlu1 %1572  ;;  %v1873_v23 = vsel %vm1871_vm10, %v1864_v38, %v3094_v14  ;;  %v3657_v38 = vld [vmem:[#allocation13_spill] sm:$0xff] }
 0x38b   : > { %v1937_v3 = vsel %vm1880_vm12, %v1929_v58, %v3037_v1  ;;  %v1902_v34 = vsel %vm1836_vm7, %v1894_v7, %v1573_v13 }
 0x38c   : > { %1947 = vst.msk [vmem:[%s3287_s6 + $0x8] sm:$0xff] %vm1945_vm14, %v1937_v3  ;;  %v1739_v20 = vpop.permute.xlu0 %1738 }
 0x38d   : > { %v1759_v60 = vsel %vm1754_vm15, %v1739_v20, %v3177_v25 }
 0x38e   : > { %v1933_v26 = vsel %vm1871_vm10, %v1925_v18, %v1759_v60  ;;  %v1593_v8 = vpop.permute.xlu1 %1592  ;;  %v3651_v60 = vld [vmem:[#allocation11_spill] sm:$0xff] }
 0x38f   : > { %v1941_v51 = vsel %vm1880_vm12, %v1933_v26, %v3154_v33  ;;  %v1908_v1 = vsel %vm1845_vm8, %v1900_v42, %v1593_v8  ;;  %v3652_v26 = vld [vmem:[#allocation12_spill] sm:$0xff] }
 0x390   : > { %1955 = vst.msk [vmem:[%s3287_s6 + $0x48] sm:$0xff] %vm1945_vm14, %v1941_v51  ;;  %v1238_v32 = vpop.permute.xlu0 %1237 }
 0x391   : > { %v1834_v14 = vsel %vm1827_vm6, %v3142_v4, %v1238_v32 }
 0x392   : > { %v1597_v56 = vpop.permute.xlu1 %1596 }
 0x393   : > { %v3428_v35 = vsel %vm1845_vm8, %v1902_v34, %v1597_v56  ;;  %v3654_v56 = vld [vmem:[#allocation15_spill] sm:$0xff] }
 0x394   : > { %v1262_v37 = vpop.permute.xlu0 %1261 }
 0x395   : > { %v1843_v41 = vsel %vm1836_vm7, %v1834_v14, %v1262_v37 }
 0x396   : > { %v1617_v15 = vpop.permute.xlu1 %1616 }
 0x397   : > { %v1916_v43 = vsel %vm784_vm4, %v1908_v1, %v1617_v15  ;;  %v3653_v1 = vld [vmem:[#allocation14_spill] sm:$0xff] }
 0x398   : > { %v1286_v25 = vpop.permute.xlu0 %1285 }
 0x399   : > { %v1852_v63 = vsel %vm1845_vm8, %v1843_v41, %v1286_v25 }
 0x39a   : > { %v3431_v16 = vpop.permute.xlu1 %1620 }
 0x39c   : > { %v1310_v31 = vpop.permute.xlu0 %1309 }
 0x39e   : > { %v1641_v59 = vpop.permute.xlu1 %1640 }
 0x39f   : > { %v3434_v33 = vsel %vm1862_vm9, %v1916_v43, %v1641_v59  ;;  %v3655_v43 = vld [vmem:[#allocation16_spill] sm:$0xff] }
 0x3a0   : > { %v1334_v50 = vpop.permute.xlu0 %1333 }
 0x3a2   : > { %v3436_v5 = vpop.permute.xlu1 %1644 }
 0x3a4   : > { %v1358_v9 = vpop.permute.xlu0 %1357 }
 0x3a6   : > { %v1729_v30 = vpop.permute.xlu1 %1728 }
 0x3a8   : > { %v1438_v7 = vpop.permute.xlu0 %1437 }
 0x3a9   : > { %v1467_v40 = vsel %vm1465_vm11, %v1438_v7, %v3336_v19 }
 0x3aa   : > { %v1882_v48 = vsel %vm1880_vm12, %v1873_v23, %v1467_v40  ;;  %v1733_v45 = vpop.permute.xlu1 %1732 }
 0x3ab   : > { %1948 = vst.msk [vmem:[%s3287_s6 + $0x10] sm:$0xff] %vm1945_vm14, %v1882_v48 }
 0x3ac   : > { %v1442_v36 = vpop.permute.xlu0 %1441 }
 0x3ad   : > { %v1468_v2 = vsel %vm1465_vm11, %v1442_v36, %v3345_v28  ;;  %v3658_v36 = vld [vmem:[#allocation18_spill] sm:$0xff] }
 0x3ae   : > { %v1883_v11 = vsel %vm1880_vm12, %v3250_v12, %v1468_v2  ;;  %v1745_v46 = vpop.permute.xlu1 %1744  ;;  %v1860_v12 = vsel %vm784_vm4, %v1852_v63, %v1310_v31 }
 0x3af   : > { %1950 = vst.msk [vmem:[%s3287_s6 + $0x20] sm:$0xff] %vm1945_vm14, %v1883_v11  ;;  %v1869_v10 = vsel %vm1862_vm9, %v1860_v12, %v1334_v50  ;;  %v3656_v50 = vld [vmem:[#allocation10_spill] sm:$0xff] }
 0x3b0   : > { %v1454_v19 = vpop.permute.xlu0 %1453  ;;  %v1878_v22 = vsel %vm1871_vm10, %v1869_v10, %v1358_v9 }
 0x3b1   : > { %v1471_v54 = vsel %vm1465_vm11, %v1454_v19, %v3353_v27 }
 0x3b2   : > { %v1886_v28 = vsel %vm1880_vm12, %v3328_v24, %v1471_v54  ;;  %v3470_v42 = vpop.permute.xlu1 %1748 }
 0x3b3   : > { %1956 = vst.msk [vmem:[%s3287_s6 + $0x50] sm:$0xff] %vm1945_vm14, %v1886_v28 }
 0x3b4   : > { %v1458_v4 = vpop.permute.xlu0 %1457 }
 0x3b5   : > { %v1472_v52 = vsel %vm1465_vm11, %v1458_v4, %v3362_v53  ;;  %v1890_v53 = vsel %vm1827_vm6, %v3651_v60, %v3126_v44 }
 0x3b6   : > { %v1887_v27 = vsel %vm1880_vm12, %v1878_v22, %v1472_v52  ;;  %v1240_v62 = vpop.permute.xlu1 %1239  ;;  %v1898_v8 = vsel %vm1836_vm7, %v1890_v53, %v3652_v26  ;;  %v3659_v26 = vld [vmem:[#allocation17_spill] sm:$0xff] }
 0x3b7   : > { %1958 = vst.msk [vmem:[%s3287_s6 + $0x60] sm:$0xff] %vm1945_vm14, %v1887_v27  ;;  %v1906_v32 = vsel %vm1845_vm8, %v1898_v8, %v3653_v1 }
 0x3b8   : > { %v1527_v24 = vpop.permute.xlu0 %1526  ;;  %v1914_v37 = vsel %vm784_vm4, %v1906_v32, %v3654_v56 }
 0x3b9   : > { %v1922_v25 = vsel %vm1862_vm9, %v1914_v37, %v3655_v43 }
 0x3ba   : > { %v1264_v0 = vpop.permute.xlu1 %1263 }
 0x3bc   : > { %v1551_v57 = vpop.permute.xlu0 %1550 }
 0x3be   : > { %v1288_v58 = vpop.permute.xlu1 %1287 }
 0x3c0   : > { %v1575_v13 = vpop.permute.xlu0 %1574 }
 0x3c2   : > { %v1312_v61 = vpop.permute.xlu1 %1311 }
 0x3c4   : > { %v1599_v3 = vpop.permute.xlu0 %1598 }
 0x3c6   : > { %v1336_v34 = vpop.permute.xlu1 %1335 }
 0x3c8   : > { %v1623_v55 = vpop.permute.xlu0 %1622 }
 0x3ca   : > { %v1360_v20 = vpop.permute.xlu1 %1359 }
 0x3cc   : > { %v1647_v18 = vpop.permute.xlu0 %1646 }
 0x3ce   : > { %v1448_v51 = vpop.permute.xlu1 %1447 }
 0x3d0   : > { %v1727_v15 = vpop.permute.xlu0 %1726 }
 0x3d1   : > { %v1756_v31 = vsel %vm1754_vm15, %v1727_v15, %v1729_v30  ;;  %v1918_v30 = vsel %vm784_vm4, %v3428_v35, %v3431_v16  ;;  %v1835_v35 = vsel %vm1827_vm6, %v3221_v47, %v1240_v62 }
 0x3d2   : > { %v1930_v59 = vsel %vm1871_vm10, %v1922_v25, %v1756_v31  ;;  %v1464_v44 = vpop.permute.xlu1 %1463  ;;  %v1926_v40 = vsel %vm1862_vm9, %v1918_v30, %v3436_v5  ;;  %v1844_v5 = vsel %vm1836_vm7, %v1835_v35, %v1264_v0 }
 0x3d3   : > { %v1938_v29 = vsel %vm1880_vm12, %v1930_v59, %v3656_v50 }
 0x3d4   : > { %1949 = vst.msk [vmem:[%s3287_s6 + $0x18] sm:$0xff] %vm1945_vm14, %v1938_v29  ;;  %v1731_v9 = vpop.permute.xlu0 %1730 }
 0x3d5   : > { %v1757_v21 = vsel %vm1754_vm15, %v1731_v9, %v1733_v45 }
 0x3d6   : > { %v1931_v6 = vsel %vm1871_vm10, %v3389_v17, %v1757_v21  ;;  %v1529_v49 = vpop.permute.xlu1 %1528 }
 0x3d7   : > { %v1939_v7 = vsel %vm1880_vm12, %v1931_v6, %v3657_v38 }
 0x3d8   : > { %1951 = vst.msk [vmem:[%s3287_s6 + $0x28] sm:$0xff] %vm1945_vm14, %v1939_v7  ;;  %v1743_v23 = vpop.permute.xlu0 %1742 }
 0x3d9   : > { %v1760_v48 = vsel %vm1754_vm15, %v1743_v23, %v1745_v46  ;;  %v1853_v46 = vsel %vm1845_vm8, %v1844_v5, %v1288_v58 }
 0x3da   : > { %v1934_v45 = vsel %vm1871_vm10, %v1926_v40, %v1760_v48  ;;  %v1553_v17 = vpop.permute.xlu1 %1552  ;;  %v1861_v63 = vsel %vm784_vm4, %v1853_v46, %v1312_v61 }
 0x3db   : > { %v1942_v2 = vsel %vm1880_vm12, %v1934_v45, %v3658_v36  ;;  %v1870_v28 = vsel %vm1862_vm9, %v1861_v63, %v1336_v34 }
 0x3dc   : > { %1957 = vst.msk [vmem:[%s3287_s6 + $0x58] sm:$0xff] %vm1945_vm14, %v1942_v2  ;;  %v1747_v11 = vpop.permute.xlu0 %1746  ;;  %v1879_v47 = vsel %vm1871_vm10, %v1870_v28, %v1360_v20 }
 0x3dd   : > { %v1761_v61 = vsel %vm1754_vm15, %v1747_v11, %v3470_v42 }
 0x3de   : > { %v1577_v14 = vpop.permute.xlu1 %1576 }
 0x3e0   : > { %v1446_v16 = vpop.permute.xlu0 %1445 }
 0x3e1   : > { %v1469_v19 = vsel %vm1465_vm11, %v1446_v16, %v1448_v51 }
 0x3e2   : > { %v1884_v41 = vsel %vm1880_vm12, %v3316_v39, %v1469_v19  ;;  %v1601_v54 = vpop.permute.xlu1 %1600  ;;  %v1895_v39 = vsel %vm1827_vm6, %v1527_v24, %v1551_v57 }
 0x3e3   : > { %1952 = vst.msk [vmem:[%s3287_s6 + $0x30] sm:$0xff] %vm1945_vm14, %v1884_v41  ;;  %v1903_v62 = vsel %vm1836_vm7, %v1895_v39, %v1575_v13 }
 0x3e4   : > { %v1462_v12 = vpop.permute.xlu0 %1461  ;;  %v1911_v58 = vsel %vm1845_vm8, %v1903_v62, %v1599_v3  ;;  %v1896_v3 = vsel %vm1827_vm6, %v1529_v49, %v1553_v17 }
 0x3e5   : > { %v1473_v10 = vsel %vm1465_vm11, %v1462_v12, %v1464_v44  ;;  %v1919_v34 = vsel %vm784_vm4, %v1911_v58, %v1623_v55  ;;  %v1904_v55 = vsel %vm1836_vm7, %v1896_v3, %v1577_v14 }
 0x3e6   : > { %v1888_v4 = vsel %vm1880_vm12, %v1879_v47, %v1473_v10  ;;  %v1625_v22 = vpop.permute.xlu1 %1624  ;;  %v1927_v60 = vsel %vm1862_vm9, %v1919_v34, %v1647_v18 }
 0x3e7   : > { %1960 = vst.msk [vmem:[%s3287_s6 + $0x70] sm:$0xff] %vm1945_vm14, %v1888_v4  ;;  %v1935_v13 = vsel %vm1871_vm10, %v1927_v60, %v1761_v61 }
 0x3e8   : > { %v1735_v52 = vpop.permute.xlu0 %1734 }
 0x3ea   : > { %v1649_v27 = vpop.permute.xlu1 %1648 }
 0x3ec   : > { %v1751_v0 = vpop.permute.xlu0 %1750 }
 0x3ee   : > { %v1737_v20 = vpop.permute.xlu1 %1736 }
 0x3ef   : > { %v1758_v53 = vsel %vm1754_vm15, %v1735_v52, %v1737_v20 }
 0x3f0   : > { %v1932_v24 = vsel %vm1871_vm10, %v3434_v33, %v1758_v53  ;;  %v1816_v57 = vpop.permute.xlu0 %1815  ;;  %v1912_v33 = vsel %vm1845_vm8, %v1904_v55, %v1601_v54 }
 0x3f1   : > { %v1940_v8 = vsel %vm1880_vm12, %v1932_v24, %v3659_v26  ;;  %v1943_v42 = vsel %vm1880_vm12, %v1935_v13, %v1816_v57  ;;  %v1920_v1 = vsel %vm784_vm4, %v1912_v33, %v1625_v22 }
 0x3f2   : > { %1953 = vst.msk [vmem:[%s3287_s6 + $0x38] sm:$0xff] %vm1945_vm14, %v1940_v8  ;;  %1959 = vst.msk [vmem:[%s3287_s6 + $0x68] sm:$0xff] %vm1945_vm14, %v1943_v42  ;;  %v1753_v18 = vpop.permute.xlu1 %1752  ;;  %v1928_v32 = vsel %vm1862_vm9, %v1920_v1, %v1649_v27 }
 0x3f3   : > { %v1762_v51 = vsel %vm1754_vm15, %v1751_v0, %v1753_v18 }
 0x3f4   : > { %v1936_v56 = vsel %vm1871_vm10, %v1928_v32, %v1762_v51 }
 0x3f6   : > { %v1818_v37 = vpop.permute.xlu1 %1817 }
 0x3f7   : > { %v1944_v15 = vsel %vm1880_vm12, %v1936_v56, %v1818_v37 }
 0x3f8   : > { %1961 = vst.msk [vmem:[%s3287_s6 + $0x78] sm:$0xff] %vm1945_vm14, %v1944_v15 }
 0x3f9   : > { %2240 = shalt.err (!%p2237_p2)
}
 0x3fa   : > { %s2241_s10 = scalar_lea.hbm %s3562_s27, 2048  ;;  %s2245_s7 = scalar_lea.hbm %s3615_s3, 4096 }
 0x3fb   : > { %p2242_p4 = scmp.ne.s32.totalorder %s3562_s27, %s2241_s10  ;;  %p2246_p9 = scmp.lt.u32.totalorder %s3562_s27, %s3615_s3 }
 0x3fc   : > { %p2247_p1 = scmp.lt.u32.totalorder %s2245_s7, %s2241_s10  ;;  %p2249_p6 = scmp.lt.u32.totalorder %s2241_s10, %s3562_s27 }
 0x3fd   : > { %p2243_p5 = pnand %p2242_p4, %p3660_p11 }
 0x3fe   : > { %p2248_p3 = por %p2247_p1, %p2246_p9 }
 0x3ff   : > { %p2244_p7 = pneg %p2243_p5 }
 0x400   : > { %p2250_p12 = por %p2249_p6, %p2248_p3 }
 0x402   : > { %p2251_p13 = pnand %p2250_p12, %p2244_p7 }
 0x404   : > { %2254 = shalt.err (!%p2251_p13)
}
 0x405   : > { %s2338_s4 = smov 128   ;;  %s2339_s6 = smov 8  }
 0x406   : > { %2105 = dma.vmem_to_hbm [thread:$0]  (%p3660_p11), %s3564_s20, 2048, %s3562_s27, %s1963_s16, %s2338_s4, %s2338_s4, %s2339_s6  }
 0x407 PF: > { %s1991_s8 = sand.u32 1, %s2281_s12   ;;  %p3661_p8 = scmp.ne.s32.totalorder %s3620_s25, 0 }
 0x408   : > { %p3662_p10 = scmp.ge.s32.totalorder %s2293_s15, 2  ;;  %s1992_s22 = scalar_lea.sflag [#allocation6], %s1991_s8 }
 0x40a   : > { %p2112_p0 = pnand %p3662_p10, %p3661_p8 }
 0x40c   : > { %2276 = dma.done.wait (!%p2112_p0), %s1992_s22, 2048  }
 0x40d   : > { %2278 = vsyncadd (!%p2112_p0), %s1992_s22, 4294965248  ;;  %p16_p2 = scmp.ge.s32.totalorder %s2385_s18, 4   ;;  %s3663_s12 = smov %s2285_s13 }
 0x40e   : > { %s3664_s13 = smov %s2289_s14  ;;  %s3665_s14 = smov %s2397_s21 }
 0x40f   : > { %s3666_s15 = smov %s2385_s18  ;;  %18 = sbr.rel (!%p16_p2) target bundleno = 5 (0x5), region = 77 }
 0x416   :  { %1997 = vsyncpa [#allocation5], 1 }
 0x417   :  { %1999 = vsyncpa [#allocation5 + $0x1], 1 }
 0x418   :  { %2000 = vsyncpa [#allocation6], 1 }
 0x419   :  { %2002 = vsyncpa [#allocation6 + $0x1], 1 }

</bundles_post_ra>
